<compile_context>
chip_gen: v5e
topology: v5e:2x2
jax: 0.10.0
libtpu: 0.0.40
codegen_flags: <defaults>
</compile_context>

<pallas_src>
import functools
import math

import jax
import jax.numpy as jnp
from jax import lax
from jax.experimental import pallas as pl
from jax.experimental.pallas import tpu as pltpu


def _band_weights(w, width):
    """(3,3,Cin,Cout) HWIO conv weights -> (3, width*Cin, width*Cout) block-banded.

    band[kh, jw*Cin+ci, j*Cout+co] = w[kh, jw-j+1, ci, co] if |jw-j| <= 1 else 0,
    folding the horizontal taps and the 'SAME' width boundary into one banded matrix
    per vertical tap, so a full conv is 3 matmuls over row-flattened activations.
    """
    kh, kw, cin, cout = w.shape
    jw = jnp.arange(width)
    sel = (jw[None, :, None] - jw[None, None, :] + kw // 2
           == jnp.arange(kw)[:, None, None]).astype(w.dtype)        # (kw, W, W)
    band = jnp.einsum('kab,hkio->haibo', sel, w)                    # (kh, W, Cin, W, Cout)
    return band.reshape(kh, width * cin, width * cout)


def _pad_channels(c, width):
    """Smallest padded channel count >= c such that width*channels % 128 == 0."""
    unit = 128 // math.gcd(128, width)
    return ((max(c, 1) + unit - 1) // unit) * unit


def _default_batch_tile(batch, height):
    """Fill the MXU M dim (<= 256 rows / step) but keep >=2 grid steps (megacore)."""
    bt = min(batch, max(1, 256 // height))
    if batch >= 2:
        bt = max(1, min(bt, batch // 2))
    while batch % bt:
        bt -= 1
    return bt


def _vmem_limit_bytes(required_bytes):
    """Per-chip VMEM budget instead of a hard-coded 32 MiB; guard oversized configs."""
    cap = 64 * 1024 * 1024                       # smallest current chip (v7x per-TC)
    try:
        info = pltpu.get_tpu_info()
        cap = int(getattr(info, "vmem_capacity_bytes", cap) or cap)
    except Exception:                            # best-effort query
        pass
    limit = int(min(cap - cap // 8, 128 * 1024 * 1024))
    if required_bytes > limit:
        raise ValueError(
            f"kernel VMEM footprint ~{required_bytes / 2**20:.1f} MiB exceeds the "
            f"~{limit / 2**20:.1f} MiB budget on this chip; use a smaller batch_tile, "
            "bf16 matmul_dtype, or tile the banded weights along their N dimension.")
    return limit


def _banded_conv(src_ref, w_ref, b_ref, dst_ref, m_up, m_dn, mm_dtype):
    """dst = 3x3 'SAME' conv of the row-flattened slab in src_ref, + bias.

    Horizontal taps + the width boundary live in the banded weights (one (K,N) slab
    per vertical tap); the vertical +-1 row neighbours come from pltpu.roll along the
    row (sublane) axis with a one-row per-image boundary mask.  Accumulation is f32
    into the VMEM dst_ref; bias is added at the final write.
    """
    rows = src_ref.shape[0]
    # center tap (kh = 1)
    dst_ref[...] = jnp.dot(src_ref[...].astype(mm_dtype), w_ref[1],
                           preferred_element_type=jnp.float32)
    # upper tap (kh = 0): output row r consumes input row r-1
    up = jnp.where(m_up, pltpu.roll(src_ref[...], shift=1, axis=0), 0.0)
    dst_ref[...] += jnp.dot(up.astype(mm_dtype), w_ref[0],
                            preferred_element_type=jnp.float32)
    # lower tap (kh = 2): output row r consumes input row r+1
    dn = jnp.where(m_dn, pltpu.roll(src_ref[...], shift=rows - 1, axis=0), 0.0)
    dst_ref[...] += jnp.dot(dn.astype(mm_dtype), w_ref[2],
                            preferred_element_type=jnp.float32)
    dst_ref[...] += b_ref[...]


def _bfn_forward_kernel(H, mm_dtype,
                        t_ref, theta_ref, w1b_ref, b1_ref, w2b_ref, b2_ref,
                        out_ref, x_ref, h_ref):
    """One batch tile (rows = bt*H image rows) per grid step.

    t_ref     : (rows, 1)         f32 per-row (per-image) time
    theta_ref : (rows, W*Cp)      f32 row-flattened, lane-dense NHWC activations
    w1b_ref   : (3, W*Cp, W*CHp)  banded conv1 weights (one slab per vertical tap)
    b1_ref    : (1, W*CHp)        f32 conv1 bias tiled over width
    w2b_ref   : (3, W*CHp, W*Cp)  banded conv2 weights
    b2_ref    : (1, W*Cp)         f32 conv2 bias tiled over width
    out_ref   : (rows, W*Cp)      f32 output block (doubles as conv2 accumulator)
    x_ref     : (rows, W*Cp)      f32 scratch: conv1 input slab
    h_ref     : (rows, W*CHp)     f32 scratch: conv1 accumulator / hidden activations
    """
    rows = x_ref.shape[0]

    # x = theta*2 - 1 + t : one fused, full-vreg (128-lane) VPU pass
    x_ref[...] = theta_ref[...] * 2.0 - 1.0 + t_ref[...]

    # vertical 'SAME' boundary masks (first / last row of each H-row image), shared
    # by both convs; computed once per grid step.
    row = lax.broadcasted_iota(jnp.int32, (rows, 1), 0)
    m_up = (row % H) != 0
    m_dn = (row % H) != H - 1

    # conv1 + bias -> ReLU (h_ref is both the accumulator and the hidden buffer)
    _banded_conv(x_ref, w1b_ref, b1_ref, h_ref, m_up, m_dn, mm_dtype)
    h_ref[...] = jnp.maximum(h_ref[...], 0.0)

    # conv2 + bias, accumulated straight into the lane-dense output block
    _banded_conv(h_ref, w2b_ref, b2_ref, out_ref, m_up, m_dn, mm_dtype)


def bfn_forward(theta, t, w1, b1, w2, b2, *,
                batch_tile=None, matmul_dtype=jnp.bfloat16):
    """theta: (B, H, W, n_classes), t: (B,) -> (B, H, W, n_classes)."""
    B, H, W, C = theta.shape
    CH = w1.shape[-1]
    assert w1.shape[:3] == (3, 3, C) and w2.shape == (3, 3, CH, C)

    Cp = _pad_channels(C, W)                       # lane-dense: W*Cp  % 128 == 0
    CHp = _pad_channels(CH, W)                     #             W*CHp % 128 == 0
    bt = _default_batch_tile(B, H) if batch_tile is None else batch_tile
    assert B % bt == 0, "batch_tile must divide the batch"
    rows = bt * H
    assert rows % 8 == 0, "batch_tile*H must be a multiple of 8 (sublane tiling)"
    WC, WCH = W * Cp, W * CHp

    # ---- wrapper-side layout plumbing only (no compute hoisted) ----
    # Zero-pad channels: padded input channels get zero conv1 weights; padded output
    # channels get zero conv2 weights + bias and are sliced off below.
    w1p = jnp.zeros((3, 3, Cp, CHp), jnp.float32).at[:, :, :C, :CH].set(w1)
    w2p = jnp.zeros((3, 3, CHp, Cp), jnp.float32).at[:, :, :CH, :C].set(w2)
    w1b = _band_weights(w1p, W).astype(matmul_dtype)                 # (3, WC,  WCH)
    w2b = _band_weights(w2p, W).astype(matmul_dtype)                 # (3, WCH, WC)
    b1r = jnp.tile(jnp.zeros((1, CHp), jnp.float32).at[:, :CH].set(b1.reshape(1, CH)),
                   (1, W))                                           # (1, WCH)
    b2r = jnp.tile(jnp.zeros((1, Cp), jnp.float32).at[:, :C].set(b2.reshape(1, C)),
                   (1, W))                                           # (1, WC)
    theta_p = jnp.zeros((B, H, W, Cp), jnp.float32).at[..., :C].set(
        theta.astype(jnp.float32))
    theta_r = theta_p.reshape(B * H, WC)                             # lane-dense rows
    t_rows = jnp.broadcast_to(t.astype(jnp.float32)[:, None], (B, H)).reshape(B * H, 1)

    # Rough VMEM footprint (double-buffered pipeline blocks + scratch slabs).
    mm_bytes = jnp.dtype(matmul_dtype).itemsize
    req_bytes = 2 * (3 * WC * WCH * mm_bytes            # conv1 band
                     + 3 * WCH * WC * mm_bytes          # conv2 band
                     + (WCH + WC) * 4                   # biases
                     + rows * (WC + 1) * 4              # theta + t input blocks
                     + rows * WC * 4                    # output block
                     ) + rows * (WC + WCH) * 4          # x / hidden scratch

    kernel = functools.partial(_bfn_forward_kernel, H, matmul_dtype)
    out = pl.pallas_call(
        kernel,
        out_shape=jax.ShapeDtypeStruct((B * H, WC), jnp.float32),
        grid=(B // bt,),
        in_specs=[
            pl.BlockSpec((rows, 1), lambda i: (i, 0)),           # t (per-row)
            pl.BlockSpec((rows, WC), lambda i: (i, 0)),          # theta rows
            # Weight / bias blocks have constant index maps, so the pipeline keeps
            # them resident across grid steps (single-buffering them is a further
            # VMEM-headroom option for very large W*CH configs; see TODO above).
            pl.BlockSpec((3, WC, WCH), lambda i: (0, 0, 0)),     # conv1 band
            pl.BlockSpec((1, WCH), lambda i: (0, 0)),            # conv1 bias
            pl.BlockSpec((3, WCH, WC), lambda i: (0, 0, 0)),     # conv2 band
            pl.BlockSpec((1, WC), lambda i: (0, 0)),             # conv2 bias
        ],
        out_specs=pl.BlockSpec((rows, WC), lambda i: (i, 0)),
        scratch_shapes=[
            pltpu.VMEM((rows, WC), jnp.float32),                 # x slab
            pltpu.VMEM((rows, WCH), jnp.float32),                # conv1 acc / hidden
        ],
        compiler_params=pltpu.CompilerParams(
            dimension_semantics=("parallel",),                   # batch tiles independent
            vmem_limit_bytes=_vmem_limit_bytes(req_bytes)),
    )(t_rows, theta_r, w1b, b1r, w2b, b2r)
    return out.reshape(B, H, W, Cp)[..., :C]


def ref_forward(theta, t, w1, b1, w2, b2, *, matmul_dtype=jnp.float32):
    """Pure-JAX reference of the same forward pass (NHWC convs, f32 accumulation)."""
    x = theta.astype(jnp.float32) * 2.0 - 1.0 + t[:, None, None, None]
    dn = ('NHWC', 'HWIO', 'NHWC')
    h = lax.conv_general_dilated(x.astype(matmul_dtype), w1.astype(matmul_dtype),
                                 (1, 1), 'SAME', dimension_numbers=dn,
                                 preferred_element_type=jnp.float32) + b1[0]
    h = jnp.maximum(h, 0.0)
    o = lax.conv_general_dilated(h.astype(matmul_dtype), w2.astype(matmul_dtype),
                                 (1, 1), 'SAME', dimension_numbers=dn,
                                 preferred_element_type=jnp.float32) + b2[0]
    return o


if __name__ == "__main__":
    B, DIM, NC, HID = 2, 16, 4, 32   # batch, spatial, n_classes, hidden channels

    key = jax.random.PRNGKey(0)
    k1, k2, k3, k4, k5, k6 = jax.random.split(key, 6)
    theta = jax.random.uniform(k1, (B, DIM, DIM, NC), jnp.float32)   # in [0, 1]
    t = jax.random.uniform(k2, (B,), jnp.float32)

    # deterministic synthetic net parameters (HWIO layout)
    w1 = jax.random.normal(k3, (3, 3, NC, HID), jnp.float32) * 0.1
    b1 = jax.random.normal(k4, (1, HID), jnp.float32) * 0.1
    w2 = jax.random.normal(k5, (3, 3, HID, NC), jnp.float32) * 0.1
    b2 = jax.random.normal(k6, (1, NC), jnp.float32) * 0.1

    # 1) exact-structure check: f32 matmul path vs the f32 conv reference
    out32 = jax.jit(functools.partial(bfn_forward, matmul_dtype=jnp.float32))(
        theta, t, w1, b1, w2, b2)
    jax.block_until_ready(out32)
    assert out32.shape == (B, DIM, DIM, NC)
    ref32 = ref_forward(theta, t, w1, b1, w2, b2)
    err32 = float(jnp.max(jnp.abs(out32 - ref32)))
    if not err32 < 1e-3:
        raise AssertionError(f"f32 kernel/reference mismatch: max abs err = {err32}")

    # 2) default path: bf16 MXU operands with f32 accumulation (fast path on
    #    v5e/v6e/v7x); compared against a bf16-operand reference with a loose bound.
    out_bf = jax.jit(bfn_forward)(theta, t, w1, b1, w2, b2)
    jax.block_until_ready(out_bf)
    ref_bf = ref_forward(theta, t, w1, b1, w2, b2, matmul_dtype=jnp.bfloat16)
    err_bf = float(jnp.max(jnp.abs(out_bf - ref_bf)))
    if not err_bf < 5e-2:
        raise AssertionError(f"bf16 kernel/reference mismatch: max abs err = {err_bf}")

    print("KERNEL_OK")
</pallas_src>

<mosaic_0001>
module attributes {stable_mosaic.version = 11 : i64} {
  func.func @_bfn_forward_kernel(%arg0: i32, %arg1: memref<16x1xf32, #tpu.memory_space<vmem>>, %arg2: memref<16x128xf32, #tpu.memory_space<vmem>>, %arg3: memref<3x128x512xf32, #tpu.memory_space<vmem>>, %arg4: memref<1x512xf32, #tpu.memory_space<vmem>>, %arg5: memref<3x512x128xf32, #tpu.memory_space<vmem>>, %arg6: memref<1x128xf32, #tpu.memory_space<vmem>>, %arg7: memref<16x128xf32, #tpu.memory_space<vmem>>, %arg8: memref<16x128xf32, #tpu.memory_space<vmem>>, %arg9: memref<16x512xf32, #tpu.memory_space<vmem>>) attributes {dimension_semantics = [#tpu.dimension_semantics<parallel>], iteration_bounds = array<i64: 2>, scalar_prefetch = 0 : i64, scratch_operands = 2 : i64, tpu.core_type = #tpu.core_type<tc>, window_params = [{transform_indices = @transform_0, window_bounds = array<i64: 16, 1>}, {transform_indices = @transform_1, window_bounds = array<i64: 16, 128>}, {pipeline_mode = #tpu.pipeline_mode<synchronous>, transform_indices = @transform_2, window_bounds = array<i64: 3, 128, 512>}, {pipeline_mode = #tpu.pipeline_mode<synchronous>, transform_indices = @transform_3, window_bounds = array<i64: 1, 512>}, {pipeline_mode = #tpu.pipeline_mode<synchronous>, transform_indices = @transform_4, window_bounds = array<i64: 3, 512, 128>}, {pipeline_mode = #tpu.pipeline_mode<synchronous>, transform_indices = @transform_5, window_bounds = array<i64: 1, 128>}, {transform_indices = @transform_6, window_bounds = array<i64: 16, 128>}]} {
    %c0 = arith.constant 0 : index
    %c0_0 = arith.constant 0 : index
    %0 = vector.load %arg2[%c0, %c0_0] : memref<16x128xf32, #tpu.memory_space<vmem>>, vector<16x128xf32>
    %cst = arith.constant 2.000000e+00 : f32
    %1 = vector.broadcast %cst : f32 to vector<16x128xf32>
    %2 = arith.mulf %0, %1 : vector<16x128xf32>
    %cst_1 = arith.constant 1.000000e+00 : f32
    %3 = vector.broadcast %cst_1 : f32 to vector<16x128xf32>
    %4 = arith.subf %2, %3 : vector<16x128xf32>
    %c0_2 = arith.constant 0 : index
    %c0_3 = arith.constant 0 : index
    %5 = vector.load %arg1[%c0_2, %c0_3] : memref<16x1xf32, #tpu.memory_space<vmem>>, vector<16x1xf32>
    %6 = vector.broadcast %5 : vector<16x1xf32> to vector<16x128xf32>
    %7 = arith.addf %4, %6 : vector<16x128xf32>
    %c0_4 = arith.constant 0 : index
    %c0_5 = arith.constant 0 : index
    %8 = vector.load %arg8[%c0_4, %c0_5] : memref<16x128xf32, #tpu.memory_space<vmem>>, vector<16x128xf32>
    tpu.vector_store %arg8[%c0_4, %c0_5], %7 {strides = array<i32>} : memref<16x128xf32, #tpu.memory_space<vmem>>, vector<16x128xf32>,
    %9 = tpu.iota {dimensions = array<i32: 0>} : vector<16x1xi32>
    %c16_i32 = arith.constant 16 : i32
    %c0_i32 = arith.constant 0 : i32
    %10 = arith.cmpi eq, %c16_i32, %c0_i32 : i32
    %c1_i32 = arith.constant 1 : i32
    %11 = arith.select %10, %c1_i32, %c16_i32 : i32
    %12 = vector.broadcast %11 : i32 to vector<16x1xi32>
    %13 = arith.remsi %9, %12 : vector<16x1xi32>
    %c0_i32_6 = arith.constant 0 : i32
    %14 = vector.broadcast %c0_i32_6 : i32 to vector<16x1xi32>
    %15 = arith.cmpi ne, %13, %14 : vector<16x1xi32>
    %c0_i32_7 = arith.constant 0 : i32
    %16 = vector.broadcast %c0_i32_7 : i32 to vector<16x1xi32>
    %17 = arith.cmpi slt, %13, %16 : vector<16x1xi32>
    %c0_i32_8 = arith.constant 0 : i32
    %18 = arith.cmpi slt, %11, %c0_i32_8 : i32
    %19 = vector.broadcast %18 : i1 to vector<16x1xi1>
    %20 = vector.broadcast %19 : vector<16x1xi1> to vector<16x1xi1>
    %21 = arith.xori %17, %20 : vector<16x1xi1>
    %22 = arith.andi %21, %15 : vector<16x1xi1>
    %23 = vector.broadcast %11 : i32 to vector<16x1xi32>
    %24 = arith.addi %13, %23 : vector<16x1xi32>
    %25 = arith.select %22, %24, %13 : vector<16x1xi1>, vector<16x1xi32>
    %c0_i32_9 = arith.constant 0 : i32
    %26 = vector.broadcast %c0_i32_9 : i32 to vector<16x1xi32>
    %27 = arith.cmpi ne, %25, %26 : vector<16x1xi32>
    %c16_i32_10 = arith.constant 16 : i32
    %c0_i32_11 = arith.constant 0 : i32
    %28 = arith.cmpi eq, %c16_i32_10, %c0_i32_11 : i32
    %c1_i32_12 = arith.constant 1 : i32
    %29 = arith.select %28, %c1_i32_12, %c16_i32_10 : i32
    %30 = vector.broadcast %29 : i32 to vector<16x1xi32>
    %31 = arith.remsi %9, %30 : vector<16x1xi32>
    %c0_i32_13 = arith.constant 0 : i32
    %32 = vector.broadcast %c0_i32_13 : i32 to vector<16x1xi32>
    %33 = arith.cmpi ne, %31, %32 : vector<16x1xi32>
    %c0_i32_14 = arith.constant 0 : i32
    %34 = vector.broadcast %c0_i32_14 : i32 to vector<16x1xi32>
    %35 = arith.cmpi slt, %31, %34 : vector<16x1xi32>
    %c0_i32_15 = arith.constant 0 : i32
    %36 = arith.cmpi slt, %29, %c0_i32_15 : i32
    %37 = vector.broadcast %36 : i1 to vector<16x1xi1>
    %38 = vector.broadcast %37 : vector<16x1xi1> to vector<16x1xi1>
    %39 = arith.xori %35, %38 : vector<16x1xi1>
    %40 = arith.andi %39, %33 : vector<16x1xi1>
    %41 = vector.broadcast %29 : i32 to vector<16x1xi32>
    %42 = arith.addi %31, %41 : vector<16x1xi32>
    %43 = arith.select %40, %42, %31 : vector<16x1xi1>, vector<16x1xi32>
    %c15_i32 = arith.constant 15 : i32
    %44 = vector.broadcast %c15_i32 : i32 to vector<16x1xi32>
    %45 = arith.cmpi ne, %43, %44 : vector<16x1xi32>
    %c0_16 = arith.constant 0 : index
    %c0_17 = arith.constant 0 : index
    %46 = vector.load %arg8[%c0_16, %c0_17] : memref<16x128xf32, #tpu.memory_space<vmem>>, vector<16x128xf32>
    %c1 = arith.constant 1 : index
    %c0_18 = arith.constant 0 : index
    %c0_19 = arith.constant 0 : index
    %47 = vector.load %arg3[%c1, %c0_18, %c0_19] : memref<3x128x512xf32, #tpu.memory_space<vmem>>, vector<1x128x512xf32>
    %48 = vector.shape_cast %47 : vector<1x128x512xf32> to vector<128x512xf32>
    %cst_20 = arith.constant dense<0.000000e+00> : vector<16x512xf32>
    %49 = tpu.matmul %46, %48, %cst_20 {dimension_numbers = #tpu.dot_dimension_numbers<[1], [0], [0], [1], [0, 0, 1, 1], [], []>} : vector<16x128xf32>, vector<128x512xf32>, vector<16x512xf32> -> vector<16x512xf32>
    %c0_21 = arith.constant 0 : index
    %c0_22 = arith.constant 0 : index
    %50 = vector.load %arg9[%c0_21, %c0_22] : memref<16x512xf32, #tpu.memory_space<vmem>>, vector<16x512xf32>
    tpu.vector_store %arg9[%c0_21, %c0_22], %49 {strides = array<i32>} : memref<16x512xf32, #tpu.memory_space<vmem>>, vector<16x512xf32>,
    %c0_23 = arith.constant 0 : index
    %c0_24 = arith.constant 0 : index
    %51 = vector.load %arg8[%c0_23, %c0_24] : memref<16x128xf32, #tpu.memory_space<vmem>>, vector<16x128xf32>
    %c1_i32_25 = arith.constant 1 : i32
    %52 = tpu.dynamic_rotate %51 by %c1_i32_25 dim 0 : vector<16x128xf32>, i32 -> vector<16x128xf32>
    %cst_26 = arith.constant 0.000000e+00 : f32
    %53 = vector.shape_cast %27 : vector<16x1xi1> to vector<16x1xi1>
    %54 = vector.broadcast %53 : vector<16x1xi1> to vector<16x128xi1>
    %55 = vector.broadcast %cst_26 : f32 to vector<16x128xf32>
    %56 = arith.select %54, %52, %55 : vector<16x128xi1>, vector<16x128xf32>
    %c0_27 = arith.constant 0 : index
    %c0_28 = arith.constant 0 : index
    %57 = vector.load %arg9[%c0_27, %c0_28] : memref<16x512xf32, #tpu.memory_space<vmem>>, vector<16x512xf32>
    %c0_29 = arith.constant 0 : index
    %c0_30 = arith.constant 0 : index
    %c0_31 = arith.constant 0 : index
    %58 = vector.load %arg3[%c0_29, %c0_30, %c0_31] : memref<3x128x512xf32, #tpu.memory_space<vmem>>, vector<1x128x512xf32>
    %59 = vector.shape_cast %58 : vector<1x128x512xf32> to vector<128x512xf32>
    %cst_32 = arith.constant dense<0.000000e+00> : vector<16x512xf32>
    %60 = tpu.matmul %56, %59, %cst_32 {dimension_numbers = #tpu.dot_dimension_numbers<[1], [0], [0], [1], [0, 0, 1, 1], [], []>} : vector<16x128xf32>, vector<128x512xf32>, vector<16x512xf32> -> vector<16x512xf32>
    %61 = arith.addf %57, %60 : vector<16x512xf32>
    %c0_33 = arith.constant 0 : index
    %c0_34 = arith.constant 0 : index
    %62 = vector.load %arg9[%c0_33, %c0_34] : memref<16x512xf32, #tpu.memory_space<vmem>>, vector<16x512xf32>
    tpu.vector_store %arg9[%c0_33, %c0_34], %61 {strides = array<i32>} : memref<16x512xf32, #tpu.memory_space<vmem>>, vector<16x512xf32>,
    %c0_35 = arith.constant 0 : index
    %c0_36 = arith.constant 0 : index
    %63 = vector.load %arg8[%c0_35, %c0_36] : memref<16x128xf32, #tpu.memory_space<vmem>>, vector<16x128xf32>
    %c15_i32_37 = arith.constant 15 : i32
    %64 = tpu.dynamic_rotate %63 by %c15_i32_37 dim 0 : vector<16x128xf32>, i32 -> vector<16x128xf32>
    %cst_38 = arith.constant 0.000000e+00 : f32
    %65 = vector.shape_cast %45 : vector<16x1xi1> to vector<16x1xi1>
    %66 = vector.broadcast %65 : vector<16x1xi1> to vector<16x128xi1>
    %67 = vector.broadcast %cst_38 : f32 to vector<16x128xf32>
    %68 = arith.select %66, %64, %67 : vector<16x128xi1>, vector<16x128xf32>
    %c0_39 = arith.constant 0 : index
    %c0_40 = arith.constant 0 : index
    %69 = vector.load %arg9[%c0_39, %c0_40] : memref<16x512xf32, #tpu.memory_space<vmem>>, vector<16x512xf32>
    %c2 = arith.constant 2 : index
    %c0_41 = arith.constant 0 : index
    %c0_42 = arith.constant 0 : index
    %70 = vector.load %arg3[%c2, %c0_41, %c0_42] : memref<3x128x512xf32, #tpu.memory_space<vmem>>, vector<1x128x512xf32>
    %71 = vector.shape_cast %70 : vector<1x128x512xf32> to vector<128x512xf32>
    %cst_43 = arith.constant dense<0.000000e+00> : vector<16x512xf32>
    %72 = tpu.matmul %68, %71, %cst_43 {dimension_numbers = #tpu.dot_dimension_numbers<[1], [0], [0], [1], [0, 0, 1, 1], [], []>} : vector<16x128xf32>, vector<128x512xf32>, vector<16x512xf32> -> vector<16x512xf32>
    %73 = arith.addf %69, %72 : vector<16x512xf32>
    %c0_44 = arith.constant 0 : index
    %c0_45 = arith.constant 0 : index
    %74 = vector.load %arg9[%c0_44, %c0_45] : memref<16x512xf32, #tpu.memory_space<vmem>>, vector<16x512xf32>
    tpu.vector_store %arg9[%c0_44, %c0_45], %73 {strides = array<i32>} : memref<16x512xf32, #tpu.memory_space<vmem>>, vector<16x512xf32>,
    %c0_46 = arith.constant 0 : index
    %c0_47 = arith.constant 0 : index
    %75 = vector.load %arg9[%c0_46, %c0_47] : memref<16x512xf32, #tpu.memory_space<vmem>>, vector<16x512xf32>
    %c0_48 = arith.constant 0 : index
    %c0_49 = arith.constant 0 : index
    %76 = vector.load %arg4[%c0_48, %c0_49] : memref<1x512xf32, #tpu.memory_space<vmem>>, vector<1x512xf32>
    %77 = vector.broadcast %76 : vector<1x512xf32> to vector<16x512xf32>
    %78 = arith.addf %75, %77 : vector<16x512xf32>
    %c0_50 = arith.constant 0 : index
    %c0_51 = arith.constant 0 : index
    %79 = vector.load %arg9[%c0_50, %c0_51] : memref<16x512xf32, #tpu.memory_space<vmem>>, vector<16x512xf32>
    tpu.vector_store %arg9[%c0_50, %c0_51], %78 {strides = array<i32>} : memref<16x512xf32, #tpu.memory_space<vmem>>, vector<16x512xf32>,
    %c0_52 = arith.constant 0 : index
    %c0_53 = arith.constant 0 : index
    %80 = vector.load %arg9[%c0_52, %c0_53] : memref<16x512xf32, #tpu.memory_space<vmem>>, vector<16x512xf32>
    %cst_54 = arith.constant 0.000000e+00 : f32
    %81 = vector.broadcast %cst_54 : f32 to vector<16x512xf32>
    %82 = arith.maximumf %80, %81 : vector<16x512xf32>
    %c0_55 = arith.constant 0 : index
    %c0_56 = arith.constant 0 : index
    %83 = vector.load %arg9[%c0_55, %c0_56] : memref<16x512xf32, #tpu.memory_space<vmem>>, vector<16x512xf32>
    tpu.vector_store %arg9[%c0_55, %c0_56], %82 {strides = array<i32>} : memref<16x512xf32, #tpu.memory_space<vmem>>, vector<16x512xf32>,
    %c0_57 = arith.constant 0 : index
    %c0_58 = arith.constant 0 : index
    %84 = vector.load %arg9[%c0_57, %c0_58] : memref<16x512xf32, #tpu.memory_space<vmem>>, vector<16x512xf32>
    %c1_59 = arith.constant 1 : index
    %c0_60 = arith.constant 0 : index
    %c0_61 = arith.constant 0 : index
    %85 = vector.load %arg5[%c1_59, %c0_60, %c0_61] : memref<3x512x128xf32, #tpu.memory_space<vmem>>, vector<1x512x128xf32>
    %86 = vector.shape_cast %85 : vector<1x512x128xf32> to vector<512x128xf32>
    %cst_62 = arith.constant dense<0.000000e+00> : vector<16x128xf32>
    %87 = tpu.matmul %84, %86, %cst_62 {dimension_numbers = #tpu.dot_dimension_numbers<[1], [0], [0], [1], [0, 0, 1, 1], [], []>} : vector<16x512xf32>, vector<512x128xf32>, vector<16x128xf32> -> vector<16x128xf32>
    %c0_63 = arith.constant 0 : index
    %c0_64 = arith.constant 0 : index
    %88 = vector.load %arg7[%c0_63, %c0_64] : memref<16x128xf32, #tpu.memory_space<vmem>>, vector<16x128xf32>
    tpu.vector_store %arg7[%c0_63, %c0_64], %87 {strides = array<i32>} : memref<16x128xf32, #tpu.memory_space<vmem>>, vector<16x128xf32>,
    %c0_65 = arith.constant 0 : index
    %c0_66 = arith.constant 0 : index
    %89 = vector.load %arg9[%c0_65, %c0_66] : memref<16x512xf32, #tpu.memory_space<vmem>>, vector<16x512xf32>
    %c1_i32_67 = arith.constant 1 : i32
    %90 = tpu.dynamic_rotate %89 by %c1_i32_67 dim 0 : vector<16x512xf32>, i32 -> vector<16x512xf32>
    %cst_68 = arith.constant 0.000000e+00 : f32
    %91 = vector.shape_cast %27 : vector<16x1xi1> to vector<16x1xi1>
    %92 = vector.broadcast %91 : vector<16x1xi1> to vector<16x512xi1>
    %93 = vector.broadcast %cst_68 : f32 to vector<16x512xf32>
    %94 = arith.select %92, %90, %93 : vector<16x512xi1>, vector<16x512xf32>
    %c0_69 = arith.constant 0 : index
    %c0_70 = arith.constant 0 : index
    %95 = vector.load %arg7[%c0_69, %c0_70] : memref<16x128xf32, #tpu.memory_space<vmem>>, vector<16x128xf32>
    %c0_71 = arith.constant 0 : index
    %c0_72 = arith.constant 0 : index
    %c0_73 = arith.constant 0 : index
    %96 = vector.load %arg5[%c0_71, %c0_72, %c0_73] : memref<3x512x128xf32, #tpu.memory_space<vmem>>, vector<1x512x128xf32>
    %97 = vector.shape_cast %96 : vector<1x512x128xf32> to vector<512x128xf32>
    %cst_74 = arith.constant dense<0.000000e+00> : vector<16x128xf32>
    %98 = tpu.matmul %94, %97, %cst_74 {dimension_numbers = #tpu.dot_dimension_numbers<[1], [0], [0], [1], [0, 0, 1, 1], [], []>} : vector<16x512xf32>, vector<512x128xf32>, vector<16x128xf32> -> vector<16x128xf32>
    %99 = arith.addf %95, %98 : vector<16x128xf32>
    %c0_75 = arith.constant 0 : index
    %c0_76 = arith.constant 0 : index
    %100 = vector.load %arg7[%c0_75, %c0_76] : memref<16x128xf32, #tpu.memory_space<vmem>>, vector<16x128xf32>
    tpu.vector_store %arg7[%c0_75, %c0_76], %99 {strides = array<i32>} : memref<16x128xf32, #tpu.memory_space<vmem>>, vector<16x128xf32>,
    %c0_77 = arith.constant 0 : index
    %c0_78 = arith.constant 0 : index
    %101 = vector.load %arg9[%c0_77, %c0_78] : memref<16x512xf32, #tpu.memory_space<vmem>>, vector<16x512xf32>
    %c15_i32_79 = arith.constant 15 : i32
    %102 = tpu.dynamic_rotate %101 by %c15_i32_79 dim 0 : vector<16x512xf32>, i32 -> vector<16x512xf32>
    %cst_80 = arith.constant 0.000000e+00 : f32
    %103 = vector.shape_cast %45 : vector<16x1xi1> to vector<16x1xi1>
    %104 = vector.broadcast %103 : vector<16x1xi1> to vector<16x512xi1>
    %105 = vector.broadcast %cst_80 : f32 to vector<16x512xf32>
    %106 = arith.select %104, %102, %105 : vector<16x512xi1>, vector<16x512xf32>
    %c0_81 = arith.constant 0 : index
    %c0_82 = arith.constant 0 : index
    %107 = vector.load %arg7[%c0_81, %c0_82] : memref<16x128xf32, #tpu.memory_space<vmem>>, vector<16x128xf32>
    %c2_83 = arith.constant 2 : index
    %c0_84 = arith.constant 0 : index
    %c0_85 = arith.constant 0 : index
    %108 = vector.load %arg5[%c2_83, %c0_84, %c0_85] : memref<3x512x128xf32, #tpu.memory_space<vmem>>, vector<1x512x128xf32>
    %109 = vector.shape_cast %108 : vector<1x512x128xf32> to vector<512x128xf32>
    %cst_86 = arith.constant dense<0.000000e+00> : vector<16x128xf32>
    %110 = tpu.matmul %106, %109, %cst_86 {dimension_numbers = #tpu.dot_dimension_numbers<[1], [0], [0], [1], [0, 0, 1, 1], [], []>} : vector<16x512xf32>, vector<512x128xf32>, vector<16x128xf32> -> vector<16x128xf32>
    %111 = arith.addf %107, %110 : vector<16x128xf32>
    %c0_87 = arith.constant 0 : index
    %c0_88 = arith.constant 0 : index
    %112 = vector.load %arg7[%c0_87, %c0_88] : memref<16x128xf32, #tpu.memory_space<vmem>>, vector<16x128xf32>
    tpu.vector_store %arg7[%c0_87, %c0_88], %111 {strides = array<i32>} : memref<16x128xf32, #tpu.memory_space<vmem>>, vector<16x128xf32>,
    %c0_89 = arith.constant 0 : index
    %c0_90 = arith.constant 0 : index
    %113 = vector.load %arg7[%c0_89, %c0_90] : memref<16x128xf32, #tpu.memory_space<vmem>>, vector<16x128xf32>
    %c0_91 = arith.constant 0 : index
    %c0_92 = arith.constant 0 : index
    %114 = vector.load %arg6[%c0_91, %c0_92] : memref<1x128xf32, #tpu.memory_space<vmem>>, vector<1x128xf32>
    %115 = vector.broadcast %114 : vector<1x128xf32> to vector<16x128xf32>
    %116 = arith.addf %113, %115 : vector<16x128xf32>
    %c0_93 = arith.constant 0 : index
    %c0_94 = arith.constant 0 : index
    %117 = vector.load %arg7[%c0_93, %c0_94] : memref<16x128xf32, #tpu.memory_space<vmem>>, vector<16x128xf32>
    tpu.vector_store %arg7[%c0_93, %c0_94], %116 {strides = array<i32>} : memref<16x128xf32, #tpu.memory_space<vmem>>, vector<16x128xf32>,
    return
  }
  func.func @transform_0(%arg0: i32) -> (i32, i32) {
    %c0_i32 = arith.constant 0 : i32
    %c0_i32_0 = arith.constant 0 : i32
    return %arg0, %c0_i32 : i32, i32
  }
  func.func @transform_1(%arg0: i32) -> (i32, i32) {
    %c0_i32 = arith.constant 0 : i32
    %c0_i32_0 = arith.constant 0 : i32
    return %arg0, %c0_i32 : i32, i32
  }
  func.func @transform_2(%arg0: i32) -> (i32, i32, i32) {
    %c0_i32 = arith.constant 0 : i32
    %c0_i32_0 = arith.constant 0 : i32
    %c0_i32_1 = arith.constant 0 : i32
    %c0_i32_2 = arith.constant 0 : i32
    return %c0_i32, %c0_i32_0, %c0_i32_1 : i32, i32, i32
  }
  func.func @transform_3(%arg0: i32) -> (i32, i32) {
    %c0_i32 = arith.constant 0 : i32
    %c0_i32_0 = arith.constant 0 : i32
    %c0_i32_1 = arith.constant 0 : i32
    return %c0_i32, %c0_i32_0 : i32, i32
  }
  func.func @transform_4(%arg0: i32) -> (i32, i32, i32) {
    %c0_i32 = arith.constant 0 : i32
    %c0_i32_0 = arith.constant 0 : i32
    %c0_i32_1 = arith.constant 0 : i32
    %c0_i32_2 = arith.constant 0 : i32
    return %c0_i32, %c0_i32_0, %c0_i32_1 : i32, i32, i32
  }
  func.func @transform_5(%arg0: i32) -> (i32, i32) {
    %c0_i32 = arith.constant 0 : i32
    %c0_i32_0 = arith.constant 0 : i32
    %c0_i32_1 = arith.constant 0 : i32
    return %c0_i32, %c0_i32_0 : i32, i32
  }
  func.func @transform_6(%arg0: i32) -> (i32, i32) {
    %c0_i32 = arith.constant 0 : i32
    %c0_i32_0 = arith.constant 0 : i32
    return %arg0, %c0_i32 : i32, i32
  }
}

</mosaic_0001>

<bundles_post_ra>
// kernel: bfn_forward.1
= control target key start
LH: loop header
LB: loop body
LE: loop exit
PB: predicated region body
PF: predicated region fallthrough
CT: control target
= control target key end

     0   :  { %s1918_s21 = smov 0   ;;  %s3306_s0 = inlined_call_operand.vmem [shape: f32[32,1], index: 0, kind: input, shape index: {}]   ;;  %s3307_s1 = inlined_call_operand.vmem [shape: f32[32,128], index: 1, kind: input, shape index: {}]   ;;  %s3308_s2 = inlined_call_operand.vmem [shape: f32[3,128,512], index: 2, kind: input, shape index: {}]   ;;  %s3309_s3 = inlined_call_operand.vmem [shape: f32[1,512], index: 3, kind: input, shape index: {}]   ;;  %s3310_s4 = inlined_call_operand.vmem [shape: f32[3,512,128], index: 4, kind: input, shape index: {}]   ;;  %s3311_s5 = inlined_call_operand.vmem [shape: f32[1,128], index: 5, kind: input, shape index: {}]   ;;  %s3312_s6 = inlined_call_operand.vmem [shape: f32[32,128], index: 6, kind: output, shape index: {}]  }
   0x1 LB: > { %s1576_s22 = sadd.s32 4294967295, %s1880_s21   ;;  %p1580_p0 = scmp.ge.s32.totalorder %s1880_s21, 1  ;;  %s1880_s21 = sphi %s1918_s21, %s16_s21  }
   0x2   : > { %p224_p1 = scmp.lt.s32.totalorder %s1880_s21, 3 }
   0x4   : > { %p225_p2 = pnand %p1580_p0, %p224_p1 }
   0x5   : > { %s1581_s23 = sshll.u32 (!%p225_p2), %s1576_s22, 1 }
   0x6   : > { %228 = sbr.rel (%p225_p2) target bundleno = 504 (0x1f8), region = 44  ;;  %p260_p3 = scmp.lt.s32.totalorder (!%p225_p2), %s1581_s23, 3 }
   0xb   : > { %v1649_v0 = vld [vmem:[%s3308_s2 + $0x3e0] sm:$0xff]  ;;  %v1650_v1 = vld [vmem:[%s3308_s2 + $0x3e8] sm:$0xff]  ;;  %v1651_v2 = vld [vmem:[%s3308_s2 + $0x3f0] sm:$0xff]  ;;  %v1882_v3 = vmov 0   ;;  %s3318_s23 = smov (!%p260_p3, %s1581_s23), 3 }
   0xc   : > { %1872 = vset.pattern.permute.xlu0 %v1882_v3  ;;  %397 = vmatpush.msra.mxu0 %v1649_v0  ;;  %v1652_v4 = vld [vmem:[%s3308_s2 + $0x3f8] sm:$0xff]  ;;  %v1645_v5 = vld [vmem:[%s3308_s2 + $0x3c0] sm:$0xff]  ;;  %v1646_v6 = vld [vmem:[%s3308_s2 + $0x3c8] sm:$0xff]  ;;  %s1965_s28 = sshll.u32 %s3318_s23, 3 }
   0xd   : > { %420 = vmatpush.msra.mxu1 %v1650_v1  ;;  %443 = vmatpush.msra.mxu2 %v1651_v2  ;;  %v1647_v7 = vld [vmem:[%s3308_s2 + $0x3d0] sm:$0xff]  ;;  %v1648_v8 = vld [vmem:[%s3308_s2 + $0x3d8] sm:$0xff]  ;;  %v1641_v9 = vld [vmem:[%s3308_s2 + $0x3a0] sm:$0xff]  ;;  %s1974_s9 = scalar_lea.vmem %s3306_s0, %s1965_s28  ;;  %s269_s20 = scalar_lea.vmem %s3307_s1, %s1965_s28 }
   0xe   : > { %466 = vmatpush.msra.mxu3 %v1652_v4  ;;  %398 = vmatpush.msra.mxu0 %v1645_v5  ;;  %v1642_v10 = vld [vmem:[%s3308_s2 + $0x3a8] sm:$0xff]  ;;  %v1643_v11 = vld [vmem:[%s3308_s2 + $0x3b0] sm:$0xff]  ;;  %v1644_v12 = vld [vmem:[%s3308_s2 + $0x3b8] sm:$0xff]  ;;  %s3287_s10 = scalar_lea.vmem %s3312_s6, %s1965_s28 }
   0xf   : > { %421 = vmatpush.msra.mxu1 %v1646_v6  ;;  %444 = vmatpush.msra.mxu2 %v1647_v7  ;;  %v1637_v13 = vld [vmem:[%s3308_s2 + $0x380] sm:$0xff]  ;;  %v1638_v14 = vld [vmem:[%s3308_s2 + $0x388] sm:$0xff]  ;;  %v1639_v15 = vld [vmem:[%s3308_s2 + $0x390] sm:$0xff] }
  0x10   : > { %467 = vmatpush.msra.mxu3 %v1648_v8  ;;  %399 = vmatpush.msra.mxu0 %v1641_v9  ;;  %v1640_v16 = vld [vmem:[%s3308_s2 + $0x398] sm:$0xff]  ;;  %v283_v17 = vld [vmem:[%s1974_s9] sm:$0xff]  ;;  %v1634_v19 = vld [vmem:[%s3308_s2 + $0x368] sm:$0xff] }
  0x11   : > { %422 = vmatpush.msra.mxu1 %v1642_v10  ;;  %445 = vmatpush.msra.mxu2 %v1643_v11  ;;  %v1633_v18 = vld [vmem:[%s3308_s2 + $0x360] sm:$0xff]  ;;  %v1635_v20 = vld [vmem:[%s3308_s2 + $0x370] sm:$0xff]  ;;  %v1636_v21 = vld [vmem:[%s3308_s2 + $0x378] sm:$0xff] }
  0x12   : > { %468 = vmatpush.msra.mxu3 %v1644_v12  ;;  %400 = vmatpush.msra.mxu0 %v1637_v13  ;;  %v1629_v22 = vld [vmem:[%s3308_s2 + $0x340] sm:$0xff]  ;;  %v1630_v23 = vld [vmem:[%s3308_s2 + $0x348] sm:$0xff]  ;;  %v1631_v24 = vld [vmem:[%s3308_s2 + $0x350] sm:$0xff] }
  0x13   : > { %287 = vperm.xlu0 %1872, %v283_v17   ;;  %423 = vmatpush.msra.mxu1 %v1638_v14  ;;  %v1632_v25 = vld [vmem:[%s3308_s2 + $0x358] sm:$0xff]  ;;  %v1625_v26 = vld [vmem:[%s3308_s2 + $0x320] sm:$0xff]  ;;  %v1626_v27 = vld [vmem:[%s3308_s2 + $0x328] sm:$0xff] }
  0x14   : > { %446 = vmatpush.msra.mxu2 %v1639_v15  ;;  %469 = vmatpush.msra.mxu3 %v1640_v16  ;;  %v1627_v28 = vld [vmem:[%s3308_s2 + $0x330] sm:$0xff]  ;;  %v1628_v29 = vld [vmem:[%s3308_s2 + $0x338] sm:$0xff]  ;;  %v284_v30 = vld [vmem:[%s1974_s9 + $0x8] sm:$0xff] }
  0x15   : > { %401 = vmatpush.msra.mxu0 %v1633_v18  ;;  %424 = vmatpush.msra.mxu1 %v1634_v19  ;;  %v1621_v31 = vld [vmem:[%s3308_s2 + $0x300] sm:$0xff]  ;;  %v1622_v32 = vld [vmem:[%s3308_s2 + $0x308] sm:$0xff]  ;;  %v1623_v33 = vld [vmem:[%s3308_s2 + $0x310] sm:$0xff] }
  0x16   : > { %447 = vmatpush.msra.mxu2 %v1635_v20  ;;  %470 = vmatpush.msra.mxu3 %v1636_v21  ;;  %v1624_v34 = vld [vmem:[%s3308_s2 + $0x318] sm:$0xff]  ;;  %v1617_v35 = vld [vmem:[%s3308_s2 + $0x2e0] sm:$0xff]  ;;  %v1618_v36 = vld [vmem:[%s3308_s2 + $0x2e8] sm:$0xff] }
  0x17   : > { %402 = vmatpush.msra.mxu0 %v1629_v22  ;;  %425 = vmatpush.msra.mxu1 %v1630_v23  ;;  %v1619_v37 = vld [vmem:[%s3308_s2 + $0x2f0] sm:$0xff]  ;;  %v1620_v38 = vld [vmem:[%s3308_s2 + $0x2f8] sm:$0xff]  ;;  %v1613_v39 = vld [vmem:[%s3308_s2 + $0x2c0] sm:$0xff] }
  0x18   : > { %448 = vmatpush.msra.mxu2 %v1631_v24  ;;  %471 = vmatpush.msra.mxu3 %v1632_v25  ;;  %v1614_v40 = vld [vmem:[%s3308_s2 + $0x2c8] sm:$0xff]  ;;  %v1615_v41 = vld [vmem:[%s3308_s2 + $0x2d0] sm:$0xff]  ;;  %v1616_v42 = vld [vmem:[%s3308_s2 + $0x2d8] sm:$0xff] }
  0x19   : > { %403 = vmatpush.msra.mxu0 %v1625_v26  ;;  %426 = vmatpush.msra.mxu1 %v1626_v27  ;;  %v1609_v43 = vld [vmem:[%s3308_s2 + $0x2a0] sm:$0xff]  ;;  %v1610_v44 = vld [vmem:[%s3308_s2 + $0x2a8] sm:$0xff]  ;;  %v1611_v45 = vld [vmem:[%s3308_s2 + $0x2b0] sm:$0xff] }
  0x1a   : > { %449 = vmatpush.msra.mxu2 %v1627_v28  ;;  %472 = vmatpush.msra.mxu3 %v1628_v29  ;;  %v1612_v46 = vld [vmem:[%s3308_s2 + $0x2b8] sm:$0xff]  ;;  %v1605_v47 = vld [vmem:[%s3308_s2 + $0x280] sm:$0xff]  ;;  %v1606_v48 = vld [vmem:[%s3308_s2 + $0x288] sm:$0xff] }
  0x1b   : > { %292 = vperm.xlu0 %1872, %v284_v30   ;;  %404 = vmatpush.msra.mxu0 %v1621_v31  ;;  %v1607_v49 = vld [vmem:[%s3308_s2 + $0x290] sm:$0xff]  ;;  %v1608_v50 = vld [vmem:[%s3308_s2 + $0x298] sm:$0xff]  ;;  %v1601_v51 = vld [vmem:[%s3308_s2 + $0x260] sm:$0xff] }
  0x1c   : > { %427 = vmatpush.msra.mxu1 %v1622_v32  ;;  %450 = vmatpush.msra.mxu2 %v1623_v33  ;;  %v1602_v52 = vld [vmem:[%s3308_s2 + $0x268] sm:$0xff]  ;;  %v1603_v53 = vld [vmem:[%s3308_s2 + $0x270] sm:$0xff]  ;;  %v1604_v54 = vld [vmem:[%s3308_s2 + $0x278] sm:$0xff] }
  0x1d   : > { %473 = vmatpush.msra.mxu3 %v1624_v34  ;;  %405 = vmatpush.msra.mxu0 %v1617_v35  ;;  %v1597_v55 = vld [vmem:[%s3308_s2 + $0x240] sm:$0xff]  ;;  %v1598_v56 = vld [vmem:[%s3308_s2 + $0x248] sm:$0xff]  ;;  %v1599_v57 = vld [vmem:[%s3308_s2 + $0x250] sm:$0xff] }
  0x1e   : > { %428 = vmatpush.msra.mxu1 %v1618_v36  ;;  %451 = vmatpush.msra.mxu2 %v1619_v37  ;;  %v1600_v58 = vld [vmem:[%s3308_s2 + $0x258] sm:$0xff]  ;;  %v1593_v59 = vld [vmem:[%s3308_s2 + $0x220] sm:$0xff]  ;;  %v1594_v60 = vld [vmem:[%s3308_s2 + $0x228] sm:$0xff] }
  0x1f   : > { %474 = vmatpush.msra.mxu3 %v1620_v38  ;;  %406 = vmatpush.msra.mxu0 %v1613_v39  ;;  %v1595_v61 = vld [vmem:[%s3308_s2 + $0x230] sm:$0xff]  ;;  %v1596_v62 = vld [vmem:[%s3308_s2 + $0x238] sm:$0xff]  ;;  %v1589_v63 = vld [vmem:[%s3308_s2 + $0x200] sm:$0xff] }
  0x20   : > { %429 = vmatpush.msra.mxu1 %v1614_v40  ;;  %452 = vmatpush.msra.mxu2 %v1615_v41  ;;  %v1590_v0 = vld [vmem:[%s3308_s2 + $0x208] sm:$0xff]  ;;  %v1591_v1 = vld [vmem:[%s3308_s2 + $0x210] sm:$0xff]  ;;  %v1592_v2 = vld [vmem:[%s3308_s2 + $0x218] sm:$0xff] }
  0x21   : > { %475 = vmatpush.msra.mxu3 %v1616_v42  ;;  %407 = vmatpush.msra.mxu0 %v1609_v43  ;;  %v578_v3 = vld [vmem:[%s3308_s2 + $0x1e0] sm:$0xff]  ;;  %v579_v4 = vld [vmem:[%s3308_s2 + $0x1e8] sm:$0xff]  ;;  %v580_v5 = vld [vmem:[%s3308_s2 + $0x1f0] sm:$0xff] }
  0x22   : > { %430 = vmatpush.msra.mxu1 %v1610_v44  ;;  %453 = vmatpush.msra.mxu2 %v1611_v45  ;;  %v581_v6 = vld [vmem:[%s3308_s2 + $0x1f8] sm:$0xff]  ;;  %v574_v7 = vld [vmem:[%s3308_s2 + $0x1c0] sm:$0xff]  ;;  %v575_v8 = vld [vmem:[%s3308_s2 + $0x1c8] sm:$0xff] }
  0x23   : > { %476 = vmatpush.msra.mxu3 %v1612_v46  ;;  %408 = vmatpush.msra.mxu0 %v1605_v47  ;;  %v576_v9 = vld [vmem:[%s3308_s2 + $0x1d0] sm:$0xff]  ;;  %v577_v10 = vld [vmem:[%s3308_s2 + $0x1d8] sm:$0xff]  ;;  %v570_v11 = vld [vmem:[%s3308_s2 + $0x1a0] sm:$0xff] }
  0x24   : > { %431 = vmatpush.msra.mxu1 %v1606_v48  ;;  %454 = vmatpush.msra.mxu2 %v1607_v49  ;;  %v571_v12 = vld [vmem:[%s3308_s2 + $0x1a8] sm:$0xff]  ;;  %v572_v13 = vld [vmem:[%s3308_s2 + $0x1b0] sm:$0xff]  ;;  %v573_v14 = vld [vmem:[%s3308_s2 + $0x1b8] sm:$0xff] }
  0x25   : > { %477 = vmatpush.msra.mxu3 %v1608_v50  ;;  %409 = vmatpush.msra.mxu0 %v1601_v51  ;;  %v566_v15 = vld [vmem:[%s3308_s2 + $0x180] sm:$0xff]  ;;  %v567_v16 = vld [vmem:[%s3308_s2 + $0x188] sm:$0xff]  ;;  %v568_v17 = vld [vmem:[%s3308_s2 + $0x190] sm:$0xff] }
  0x26   : > { %432 = vmatpush.msra.mxu1 %v1602_v52  ;;  %455 = vmatpush.msra.mxu2 %v1603_v53  ;;  %v569_v18 = vld [vmem:[%s3308_s2 + $0x198] sm:$0xff]  ;;  %v562_v19 = vld [vmem:[%s3308_s2 + $0x160] sm:$0xff]  ;;  %v563_v20 = vld [vmem:[%s3308_s2 + $0x168] sm:$0xff] }
  0x27   : > { %478 = vmatpush.msra.mxu3 %v1604_v54  ;;  %410 = vmatpush.msra.mxu0 %v1597_v55  ;;  %v564_v21 = vld [vmem:[%s3308_s2 + $0x170] sm:$0xff]  ;;  %v565_v22 = vld [vmem:[%s3308_s2 + $0x178] sm:$0xff]  ;;  %v558_v23 = vld [vmem:[%s3308_s2 + $0x140] sm:$0xff] }
  0x28   : > { %433 = vmatpush.msra.mxu1 %v1598_v56  ;;  %456 = vmatpush.msra.mxu2 %v1599_v57  ;;  %v559_v24 = vld [vmem:[%s3308_s2 + $0x148] sm:$0xff]  ;;  %v560_v25 = vld [vmem:[%s3308_s2 + $0x150] sm:$0xff]  ;;  %v561_v26 = vld [vmem:[%s3308_s2 + $0x158] sm:$0xff] }
  0x29   : > { %479 = vmatpush.msra.mxu3 %v1600_v58  ;;  %411 = vmatpush.msra.mxu0 %v1593_v59  ;;  %v554_v27 = vld [vmem:[%s3308_s2 + $0x120] sm:$0xff]  ;;  %v555_v28 = vld [vmem:[%s3308_s2 + $0x128] sm:$0xff]  ;;  %v556_v29 = vld [vmem:[%s3308_s2 + $0x130] sm:$0xff] }
  0x2a   : > { %434 = vmatpush.msra.mxu1 %v1594_v60  ;;  %457 = vmatpush.msra.mxu2 %v1595_v61  ;;  %v557_v30 = vld [vmem:[%s3308_s2 + $0x138] sm:$0xff]  ;;  %v550_v31 = vld [vmem:[%s3308_s2 + $0x100] sm:$0xff]  ;;  %v551_v32 = vld [vmem:[%s3308_s2 + $0x108] sm:$0xff] }
  0x2b   : > { %480 = vmatpush.msra.mxu3 %v1596_v62  ;;  %412 = vmatpush.msra.mxu0 %v1589_v63  ;;  %v552_v33 = vld [vmem:[%s3308_s2 + $0x110] sm:$0xff]  ;;  %v553_v34 = vld [vmem:[%s3308_s2 + $0x118] sm:$0xff]  ;;  %v546_v35 = vld [vmem:[%s3308_s2 + $0xe0] sm:$0xff] }
  0x2c   : > { %435 = vmatpush.msra.mxu1 %v1590_v0  ;;  %458 = vmatpush.msra.mxu2 %v1591_v1  ;;  %v547_v36 = vld [vmem:[%s3308_s2 + $0xe8] sm:$0xff]  ;;  %v548_v37 = vld [vmem:[%s3308_s2 + $0xf0] sm:$0xff]  ;;  %v549_v38 = vld [vmem:[%s3308_s2 + $0xf8] sm:$0xff] }
  0x2d   : > { %481 = vmatpush.msra.mxu3 %v1592_v2  ;;  %582 = vmatpush.msrb.mxu0 %v578_v3  ;;  %v542_v39 = vld [vmem:[%s3308_s2 + $0xc0] sm:$0xff]  ;;  %v543_v40 = vld [vmem:[%s3308_s2 + $0xc8] sm:$0xff]  ;;  %v544_v41 = vld [vmem:[%s3308_s2 + $0xd0] sm:$0xff] }
  0x2e   : > { %605 = vmatpush.msrb.mxu1 %v579_v4  ;;  %628 = vmatpush.msrb.mxu2 %v580_v5  ;;  %v545_v42 = vld [vmem:[%s3308_s2 + $0xd8] sm:$0xff]  ;;  %v538_v43 = vld [vmem:[%s3308_s2 + $0xa0] sm:$0xff]  ;;  %v539_v44 = vld [vmem:[%s3308_s2 + $0xa8] sm:$0xff] }
  0x2f   : > { %651 = vmatpush.msrb.mxu3 %v581_v6  ;;  %583 = vmatpush.msrb.mxu0 %v574_v7  ;;  %v540_v45 = vld [vmem:[%s3308_s2 + $0xb0] sm:$0xff]  ;;  %v541_v46 = vld [vmem:[%s3308_s2 + $0xb8] sm:$0xff]  ;;  %v534_v47 = vld [vmem:[%s3308_s2 + $0x80] sm:$0xff] }
  0x30   : > { %606 = vmatpush.msrb.mxu1 %v575_v8  ;;  %629 = vmatpush.msrb.mxu2 %v576_v9  ;;  %v535_v48 = vld [vmem:[%s3308_s2 + $0x88] sm:$0xff]  ;;  %v536_v49 = vld [vmem:[%s3308_s2 + $0x90] sm:$0xff]  ;;  %v537_v50 = vld [vmem:[%s3308_s2 + $0x98] sm:$0xff] }
  0x31   : > { %652 = vmatpush.msrb.mxu3 %v577_v10  ;;  %584 = vmatpush.msrb.mxu0 %v570_v11  ;;  %v530_v51 = vld [vmem:[%s3308_s2 + $0x60] sm:$0xff]  ;;  %v531_v52 = vld [vmem:[%s3308_s2 + $0x68] sm:$0xff]  ;;  %v532_v53 = vld [vmem:[%s3308_s2 + $0x70] sm:$0xff] }
  0x32   : > { %607 = vmatpush.msrb.mxu1 %v571_v12  ;;  %630 = vmatpush.msrb.mxu2 %v572_v13  ;;  %v533_v54 = vld [vmem:[%s3308_s2 + $0x78] sm:$0xff]  ;;  %v526_v55 = vld [vmem:[%s3308_s2 + $0x40] sm:$0xff]  ;;  %v527_v56 = vld [vmem:[%s3308_s2 + $0x48] sm:$0xff] }
  0x33   : > { %653 = vmatpush.msrb.mxu3 %v573_v14  ;;  %585 = vmatpush.msrb.mxu0 %v566_v15  ;;  %v528_v57 = vld [vmem:[%s3308_s2 + $0x50] sm:$0xff]  ;;  %v529_v58 = vld [vmem:[%s3308_s2 + $0x58] sm:$0xff]  ;;  %v522_v59 = vld [vmem:[%s3308_s2 + $0x20] sm:$0xff] }
  0x34   : > { %608 = vmatpush.msrb.mxu1 %v567_v16  ;;  %631 = vmatpush.msrb.mxu2 %v568_v17  ;;  %v523_v60 = vld [vmem:[%s3308_s2 + $0x28] sm:$0xff]  ;;  %v524_v61 = vld [vmem:[%s3308_s2 + $0x30] sm:$0xff]  ;;  %v525_v62 = vld [vmem:[%s3308_s2 + $0x38] sm:$0xff] }
  0x35   : > { %654 = vmatpush.msrb.mxu3 %v569_v18  ;;  %586 = vmatpush.msrb.mxu0 %v562_v19  ;;  %v518_v63 = vld [vmem:[%s3308_s2] sm:$0xff]  ;;  %v519_v0 = vld [vmem:[%s3308_s2 + $0x8] sm:$0xff]  ;;  %v520_v1 = vld [vmem:[%s3308_s2 + $0x10] sm:$0xff] }
  0x36   : > { %609 = vmatpush.msrb.mxu1 %v563_v20  ;;  %632 = vmatpush.msrb.mxu2 %v564_v21  ;;  %v521_v2 = vld [vmem:[%s3308_s2 + $0x18] sm:$0xff]  ;;  %v277_v3 = vld [vmem:[%s269_s20] sm:$0xff]  ;;  %v278_v6 = vld [vmem:[%s269_s20 + $0x8] sm:$0xff] }
  0x37   : > { %655 = vmatpush.msrb.mxu3 %v565_v22  ;;  %587 = vmatpush.msrb.mxu0 %v558_v23  ;;  %v279_v4 = vmul.f32 2.0, %v277_v3  ;;  %v280_v9 = vmul.f32 2.0, %v278_v6  ;;  %v1717_v10 = vld [vmem:[%s3308_s2 + $0x5e0] sm:$0xff]  ;;  %v1718_v11 = vld [vmem:[%s3308_s2 + $0x5e8] sm:$0xff]  ;;  %v1719_v12 = vld [vmem:[%s3308_s2 + $0x5f0] sm:$0xff] }
  0x38   : > { %610 = vmatpush.msrb.mxu1 %v559_v24  ;;  %633 = vmatpush.msrb.mxu2 %v560_v25  ;;  %v1720_v13 = vld [vmem:[%s3308_s2 + $0x5f8] sm:$0xff]  ;;  %v1713_v14 = vld [vmem:[%s3308_s2 + $0x5c0] sm:$0xff]  ;;  %v1714_v15 = vld [vmem:[%s3308_s2 + $0x5c8] sm:$0xff] }
  0x39   : > { %656 = vmatpush.msrb.mxu3 %v561_v26  ;;  %588 = vmatpush.msrb.mxu0 %v554_v27  ;;  %v1587_v5 = vadd.f32 -1.0, %v279_v4  ;;  %v1715_v16 = vld [vmem:[%s3308_s2 + $0x5d0] sm:$0xff]  ;;  %v1716_v17 = vld [vmem:[%s3308_s2 + $0x5d8] sm:$0xff]  ;;  %v1588_v18 = vadd.f32 -1.0, %v280_v9  ;;  %v1709_v19 = vld [vmem:[%s3308_s2 + $0x5a0] sm:$0xff] }
  0x3a   : > { %611 = vmatpush.msrb.mxu1 %v555_v28  ;;  %634 = vmatpush.msrb.mxu2 %v556_v29  ;;  %v1710_v20 = vld [vmem:[%s3308_s2 + $0x5a8] sm:$0xff]  ;;  %v1711_v21 = vld [vmem:[%s3308_s2 + $0x5b0] sm:$0xff]  ;;  %v1712_v22 = vld [vmem:[%s3308_s2 + $0x5b8] sm:$0xff]  ;;  %v299_v29 = vlaneseq }
  0x3b   : > { %657 = vmatpush.msrb.mxu3 %v557_v30  ;;  %589 = vmatpush.msrb.mxu0 %v550_v31  ;;  %v1705_v24 = vld [vmem:[%s3308_s2 + $0x580] sm:$0xff]  ;;  %v1706_v25 = vld [vmem:[%s3308_s2 + $0x588] sm:$0xff]  ;;  %v1707_v27 = vld [vmem:[%s3308_s2 + $0x590] sm:$0xff] }
  0x3c   : > { %612 = vmatpush.msrb.mxu1 %v551_v32  ;;  %635 = vmatpush.msrb.mxu2 %v552_v33  ;;  %v1708_v28 = vld [vmem:[%s3308_s2 + $0x598] sm:$0xff]  ;;  %v1701_v30 = vld [vmem:[%s3308_s2 + $0x560] sm:$0xff]  ;;  %v1702_v31 = vld [vmem:[%s3308_s2 + $0x568] sm:$0xff] }
  0x3d   : > { %658 = vmatpush.msrb.mxu3 %v553_v34  ;;  %590 = vmatpush.msrb.mxu0 %v546_v35  ;;  %v1703_v32 = vld [vmem:[%s3308_s2 + $0x570] sm:$0xff]  ;;  %v1704_v33 = vld [vmem:[%s3308_s2 + $0x578] sm:$0xff]  ;;  %v1697_v34 = vld [vmem:[%s3308_s2 + $0x540] sm:$0xff] }
  0x3e   : > { %613 = vmatpush.msrb.mxu1 %v547_v36  ;;  %636 = vmatpush.msrb.mxu2 %v548_v37  ;;  %v1698_v35 = vld [vmem:[%s3308_s2 + $0x548] sm:$0xff]  ;;  %v2402_v36 = vshrl.u32 %v299_v29, 7  ;;  %v1699_v37 = vld [vmem:[%s3308_s2 + $0x550] sm:$0xff]  ;;  %v1676_v3 = vld [vmem:[%s3308_s2 + $0x498] sm:$0xff] }
  0x3f   : > { %659 = vmatpush.msrb.mxu3 %v549_v38  ;;  %591 = vmatpush.msrb.mxu0 %v542_v39  ;;  %v1700_v38 = vld [vmem:[%s3308_s2 + $0x558] sm:$0xff]  ;;  %v1693_v39 = vld [vmem:[%s3308_s2 + $0x520] sm:$0xff]  ;;  %v1670_v6 = vld [vmem:[%s3308_s2 + $0x468] sm:$0xff] }
  0x40   : > { %614 = vmatpush.msrb.mxu1 %v543_v40  ;;  %637 = vmatpush.msrb.mxu2 %v544_v41  ;;  %v1694_v40 = vld [vmem:[%s3308_s2 + $0x528] sm:$0xff]  ;;  %v306_v41 = vand.u32 15, %v2402_v36  ;;  %vm501_vm0 = vcmp.lt.s32.totalorder %v2402_v36, 1  ;;  %v1672_v9 = vld [vmem:[%s3308_s2 + $0x478] sm:$0xff]  ;;  %vm694_vm2 = vcmp.lt.s32.totalorder %v2402_v36, 7 }
  0x41   : > { %660 = vmatpush.msrb.mxu3 %v545_v42  ;;  %592 = vmatpush.msrb.mxu0 %v538_v43  ;;  %v1695_v42 = vld [vmem:[%s3308_s2 + $0x530] sm:$0xff]  ;;  %v1696_v43 = vld [vmem:[%s3308_s2 + $0x538] sm:$0xff] }
  0x42   : > { %615 = vmatpush.msrb.mxu1 %v539_v44  ;;  %638 = vmatpush.msrb.mxu2 %v540_v45  ;;  %v1689_v44 = vld [vmem:[%s3308_s2 + $0x500] sm:$0xff]  ;;  %v1690_v45 = vld [vmem:[%s3308_s2 + $0x508] sm:$0xff]  ;;  %vm2437_vm1 = vcmp.ne.s32.totalorder %v306_v41, 0 }
  0x43   : > { %661 = vmatpush.msrb.mxu3 %v541_v46  ;;  %593 = vmatpush.msrb.mxu0 %v534_v47  ;;  %v1691_v47 = vld [vmem:[%s3308_s2 + $0x510] sm:$0xff]  ;;  %v1737_v41 = vld [vmem:[%s3310_s4 + $0x260] sm:$0xff] }
  0x44   : > { %616 = vmatpush.msrb.mxu1 %v535_v48  ;;  %639 = vmatpush.msrb.mxu2 %v536_v49  ;;  %v1692_v48 = vld [vmem:[%s3308_s2 + $0x518] sm:$0xff] }
  0x45   : > { %662 = vmatpush.msrb.mxu3 %v537_v50  ;;  %594 = vmatpush.msrb.mxu0 %v530_v51 }
  0x46   : > { %617 = vmatpush.msrb.mxu1 %v531_v52  ;;  %640 = vmatpush.msrb.mxu2 %v532_v53  ;;  %v1685_v52 = vld [vmem:[%s3308_s2 + $0x4e0] sm:$0xff]  ;;  %v1686_v53 = vld [vmem:[%s3308_s2 + $0x4e8] sm:$0xff] }
  0x47   : > { %663 = vmatpush.msrb.mxu3 %v533_v54  ;;  %595 = vmatpush.msrb.mxu0 %v526_v55  ;;  %v1687_v54 = vld [vmem:[%s3308_s2 + $0x4f0] sm:$0xff]  ;;  %v1688_v55 = vld [vmem:[%s3308_s2 + $0x4f8] sm:$0xff] }
  0x48   : > { %618 = vmatpush.msrb.mxu1 %v527_v56  ;;  %641 = vmatpush.msrb.mxu2 %v528_v57  ;;  %v1681_v56 = vld [vmem:[%s3308_s2 + $0x4c0] sm:$0xff]  ;;  %v1682_v57 = vld [vmem:[%s3308_s2 + $0x4c8] sm:$0xff] }
  0x49   : > { %664 = vmatpush.msrb.mxu3 %v529_v58  ;;  %596 = vmatpush.msrb.mxu0 %v522_v59  ;;  %v1683_v58 = vld [vmem:[%s3308_s2 + $0x4d0] sm:$0xff]  ;;  %v1684_v59 = vld [vmem:[%s3308_s2 + $0x4d8] sm:$0xff] }
  0x4a   : > { %619 = vmatpush.msrb.mxu1 %v523_v60  ;;  %642 = vmatpush.msrb.mxu2 %v524_v61  ;;  %v1677_v60 = vld [vmem:[%s3308_s2 + $0x4a0] sm:$0xff]  ;;  %v1678_v61 = vld [vmem:[%s3308_s2 + $0x4a8] sm:$0xff] }
  0x4b   : > { %665 = vmatpush.msrb.mxu3 %v525_v62  ;;  %597 = vmatpush.msrb.mxu0 %v518_v63  ;;  %v1679_v62 = vld [vmem:[%s3308_s2 + $0x4b0] sm:$0xff]  ;;  %v1680_v63 = vld [vmem:[%s3308_s2 + $0x4b8] sm:$0xff] }
  0x4c   : > { %620 = vmatpush.msrb.mxu1 %v519_v0  ;;  %643 = vmatpush.msrb.mxu2 %v520_v1  ;;  %v1673_v0 = vld [vmem:[%s3308_s2 + $0x480] sm:$0xff]  ;;  %v1674_v1 = vld [vmem:[%s3308_s2 + $0x488] sm:$0xff] }
  0x4d   : > { %666 = vmatpush.msrb.mxu3 %v521_v2  ;;  %v1675_v2 = vld [vmem:[%s3308_s2 + $0x490] sm:$0xff] }
  0x85   : > { %v288_v7 = vpop.permute.xlu0 %287 }
  0x86   : > { %v2324_v8 = vadd.f32 %v1587_v5, %v288_v7  ;;  %v1669_v5 = vld [vmem:[%s3308_s2 + $0x460] sm:$0xff]  ;;  %v1671_v7 = vld [vmem:[%s3308_s2 + $0x470] sm:$0xff] }
  0x88   : > { %413 = vmatmul.f32.vlgmr.msra.gmra.mxu0 %v2324_v8  ;;  %436 = vmatmul.f32.vlgmr.msra.gmra.mxu1 %v2324_v8  ;;  %v499_v50 = vrot.slane %v2324_v8, 7 }
  0x89   : > { %459 = vmatmul.f32.vlgmr.msra.gmra.mxu2 %v2324_v8  ;;  %482 = vmatmul.f32.vlgmr.msra.gmra.mxu3 %v2324_v8 }
  0x8a   : > { %776 = vmatpush.msra.mxu0 %v1717_v10  ;;  %799 = vmatpush.msra.mxu1 %v1718_v11  ;;  %v1665_v10 = vld [vmem:[%s3308_s2 + $0x440] sm:$0xff]  ;;  %v1666_v11 = vld [vmem:[%s3308_s2 + $0x448] sm:$0xff] }
  0x8b   : > { %822 = vmatpush.msra.mxu2 %v1719_v12  ;;  %845 = vmatpush.msra.mxu3 %v1720_v13  ;;  %v1667_v12 = vld [vmem:[%s3308_s2 + $0x450] sm:$0xff]  ;;  %v1668_v13 = vld [vmem:[%s3308_s2 + $0x458] sm:$0xff] }
  0x8c   : > { %777 = vmatpush.msra.mxu0 %v1713_v14  ;;  %800 = vmatpush.msra.mxu1 %v1714_v15  ;;  %v1661_v14 = vld [vmem:[%s3308_s2 + $0x420] sm:$0xff]  ;;  %v1662_v15 = vld [vmem:[%s3308_s2 + $0x428] sm:$0xff] }
  0x8d   : > { %823 = vmatpush.msra.mxu2 %v1715_v16  ;;  %846 = vmatpush.msra.mxu3 %v1716_v17  ;;  %v293_v23 = vpop.permute.xlu0 %292  ;;  %v1663_v16 = vld [vmem:[%s3308_s2 + $0x430] sm:$0xff]  ;;  %v1664_v17 = vld [vmem:[%s3308_s2 + $0x438] sm:$0xff] }
  0x8e   : > { %778 = vmatpush.msra.mxu0 %v1709_v19  ;;  %801 = vmatpush.msra.mxu1 %v1710_v20  ;;  %v2372_v26 = vadd.f32 %v1588_v18, %v293_v23  ;;  %v1657_v18 = vld [vmem:[%s3308_s2 + $0x400] sm:$0xff]  ;;  %v1658_v19 = vld [vmem:[%s3308_s2 + $0x408] sm:$0xff]  ;;  %v692_v23 = vrot.slane %v2324_v8, 1  ;;  %v1772_v8 = vld [vmem:[%s3310_s4 + $0x378] sm:$0xff] }
  0x8f   : > { %824 = vmatpush.msra.mxu2 %v1711_v21  ;;  %847 = vmatpush.msra.mxu3 %v1712_v22  ;;  %v1659_v21 = vld [vmem:[%s3308_s2 + $0x410] sm:$0xff]  ;;  %v1660_v22 = vld [vmem:[%s3308_s2 + $0x418] sm:$0xff] }
  0x90   : > { %779 = vmatpush.msra.mxu0 %v1705_v24  ;;  %802 = vmatpush.msra.mxu1 %v1706_v25  ;;  %v500_v46 = vrot.slane %v2372_v26, 7  ;;  %v693_v20 = vrot.slane %v2372_v26, 1  ;;  %v301_v24 = vadd.s32 8, %v2402_v36 }
  0x91   : > { %825 = vmatpush.msra.mxu2 %v1707_v27  ;;  %848 = vmatpush.msra.mxu3 %v1708_v28  ;;  %v1756_v27 = vld [vmem:[%s3310_s4 + $0x2f8] sm:$0xff] }
  0x92   : > { %416 = vmatmul.f32.gmra.mxu0 %v2372_v26  ;;  %439 = vmatmul.f32.gmra.mxu1 %v2372_v26  ;;  %v503_v51 = vsel %vm501_vm0, %v500_v46, %v499_v50  ;;  %v502_v4 = vsel %vm501_vm0, %v499_v50, %v500_v46  ;;  %v695_v25 = vsel %vm694_vm2, %v692_v23, %v693_v20  ;;  %v1788_v28 = vld [vmem:[%s3310_s4 + $0x3f8] sm:$0xff]  ;;  %v313_v29 = vand.u32 15, %v301_v24  ;;  %v1735_v50 = vld [vmem:[%s3310_s4 + $0x250] sm:$0xff] }
  0x93   : > { %462 = vmatmul.f32.gmra.mxu2 %v2372_v26  ;;  %485 = vmatmul.f32.gmra.mxu3 %v2372_v26  ;;  %v1740_v26 = vld [vmem:[%s3310_s4 + $0x278] sm:$0xff] }
  0x94   : > { %780 = vmatpush.msra.mxu0 %v1701_v30  ;;  %803 = vmatpush.msra.mxu1 %v1702_v31  ;;  %v1739_v30 = vld [vmem:[%s3310_s4 + $0x270] sm:$0xff]  ;;  %vm2592_vm3 = vcmp.ne.s32.totalorder %v313_v29, 15  ;;  %v1752_v46 = vld [vmem:[%s3310_s4 + $0x2d8] sm:$0xff] }
  0x95   : > { %826 = vmatpush.msra.mxu2 %v1703_v32  ;;  %849 = vmatpush.msra.mxu3 %v1704_v33  ;;  %v1755_v31 = vld [vmem:[%s3310_s4 + $0x2f0] sm:$0xff]  ;;  %v1776_v24 = vld [vmem:[%s3310_s4 + $0x398] sm:$0xff] }
  0x96   : > { %781 = vmatpush.msra.mxu0 %v1697_v34  ;;  %804 = vmatpush.msra.mxu1 %v1698_v35  ;;  %v1771_v32 = vld [vmem:[%s3310_s4 + $0x370] sm:$0xff]  ;;  %v1738_v34 = vld [vmem:[%s3310_s4 + $0x268] sm:$0xff] }
  0x97   : > { %827 = vmatpush.msra.mxu2 %v1699_v37  ;;  %850 = vmatpush.msra.mxu3 %v1700_v38  ;;  %v1787_v33 = vld [vmem:[%s3310_s4 + $0x3f0] sm:$0xff]  ;;  %v1754_v35 = vld [vmem:[%s3310_s4 + $0x2e8] sm:$0xff] }
  0x98   : > { %782 = vmatpush.msra.mxu0 %v1693_v39  ;;  %805 = vmatpush.msra.mxu1 %v1694_v40  ;;  %v1770_v37 = vld [vmem:[%s3310_s4 + $0x368] sm:$0xff]  ;;  %v696_v40 = vsel %vm694_vm2, %v693_v20, %v692_v23  ;;  %v1777_v20 = vld [vmem:[%s3310_s4 + $0x3a0] sm:$0xff]  ;;  %v1760_v23 = vld [vmem:[%s3310_s4 + $0x318] sm:$0xff] }
  0x99   : > { %828 = vmatpush.msra.mxu2 %v1695_v42  ;;  %851 = vmatpush.msra.mxu3 %v1696_v43  ;;  %v1786_v38 = vld [vmem:[%s3310_s4 + $0x3e8] sm:$0xff]  ;;  %v1753_v42 = vld [vmem:[%s3310_s4 + $0x2e0] sm:$0xff]  ;;  %v1173_v29 = vld [vmem:[%s3310_s4 + $0xf0] sm:$0xff] }
  0x9a   : > { %783 = vmatpush.msra.mxu0 %v1689_v44  ;;  %806 = vmatpush.msra.mxu1 %v1690_v45  ;;  %v1769_v43 = vld [vmem:[%s3310_s4 + $0x360] sm:$0xff]  ;;  %v1736_v45 = vld [vmem:[%s3310_s4 + $0x258] sm:$0xff] }
  0x9b   : > { %829 = vmatpush.msra.mxu2 %v1691_v47  ;;  %852 = vmatpush.msra.mxu3 %v1692_v48  ;;  %v1785_v44 = vld [vmem:[%s3310_s4 + $0x3e0] sm:$0xff]  ;;  %v1768_v47 = vld [vmem:[%s3310_s4 + $0x358] sm:$0xff] }
  0x9c   : > { %1653 = vmatmul.msk.f32.vlgmr.msrb.gmra.mxu0 %vm2437_vm1, %v503_v51  ;;  %1654 = vmatmul.msk.f32.vlgmr.msrb.gmra.mxu1 %vm2437_vm1, %v503_v51  ;;  %v1784_v48 = vld [vmem:[%s3310_s4 + $0x3d8] sm:$0xff] }
  0x9d   : > { %1655 = vmatmul.msk.f32.vlgmr.msrb.gmra.mxu2 %vm2437_vm1, %v503_v51  ;;  %1656 = vmatmul.msk.f32.vlgmr.msrb.gmra.mxu3 %vm2437_vm1, %v503_v51  ;;  %v1751_v51 = vld [vmem:[%s3310_s4 + $0x2d0] sm:$0xff] }
  0x9e   : > { %784 = vmatpush.msra.mxu0 %v1685_v52  ;;  %807 = vmatpush.msra.mxu1 %v1686_v53  ;;  %v1767_v52 = vld [vmem:[%s3310_s4 + $0x350] sm:$0xff] }
  0x9f   : > { %830 = vmatpush.msra.mxu2 %v1687_v54  ;;  %853 = vmatpush.msra.mxu3 %v1688_v55  ;;  %v1783_v53 = vld [vmem:[%s3310_s4 + $0x3d0] sm:$0xff]  ;;  %v1734_v54 = vld [vmem:[%s3310_s4 + $0x248] sm:$0xff] }
  0xa0   : > { %785 = vmatpush.msra.mxu0 %v1681_v56  ;;  %808 = vmatpush.msra.mxu1 %v1682_v57  ;;  %v1750_v55 = vld [vmem:[%s3310_s4 + $0x2c8] sm:$0xff] }
  0xa1   : > { %831 = vmatpush.msra.mxu2 %v1683_v58  ;;  %854 = vmatpush.msra.mxu3 %v1684_v59  ;;  %v1766_v56 = vld [vmem:[%s3310_s4 + $0x348] sm:$0xff]  ;;  %v1733_v58 = vld [vmem:[%s3310_s4 + $0x240] sm:$0xff] }
  0xa2   : > { %786 = vmatpush.msra.mxu0 %v1677_v60  ;;  %809 = vmatpush.msra.mxu1 %v1678_v61  ;;  %v1782_v57 = vld [vmem:[%s3310_s4 + $0x3c8] sm:$0xff]  ;;  %v1749_v59 = vld [vmem:[%s3310_s4 + $0x2c0] sm:$0xff] }
  0xa3   : > { %832 = vmatpush.msra.mxu2 %v1679_v62  ;;  %855 = vmatpush.msra.mxu3 %v1680_v63  ;;  %v1765_v60 = vld [vmem:[%s3310_s4 + $0x340] sm:$0xff]  ;;  %v1732_v62 = vld [vmem:[%s3310_s4 + $0x238] sm:$0xff] }
  0xa4   : > { %787 = vmatpush.msra.mxu0 %v1673_v0  ;;  %810 = vmatpush.msra.mxu1 %v1674_v1  ;;  %v1781_v61 = vld [vmem:[%s3310_s4 + $0x3c0] sm:$0xff]  ;;  %v1748_v63 = vld [vmem:[%s3310_s4 + $0x2b8] sm:$0xff]  ;;  %v1731_v0 = vld [vmem:[%s3310_s4 + $0x230] sm:$0xff] }
  0xa5   : > { %833 = vmatpush.msra.mxu2 %v1675_v2  ;;  %856 = vmatpush.msra.mxu3 %v1676_v3  ;;  %v1747_v1 = vld [vmem:[%s3310_s4 + $0x2b0] sm:$0xff]  ;;  %v1730_v2 = vld [vmem:[%s3310_s4 + $0x228] sm:$0xff] }
  0xa6   : > { %601 = vmatmul.f32.gmra.mxu0 %v502_v4  ;;  %624 = vmatmul.f32.gmra.mxu1 %v502_v4  ;;  %v1746_v3 = vld [vmem:[%s3310_s4 + $0x2a8] sm:$0xff] }
  0xa7   : > { %647 = vmatmul.f32.gmra.mxu2 %v502_v4  ;;  %670 = vmatmul.f32.gmra.mxu3 %v502_v4  ;;  %v1729_v4 = vld [vmem:[%s3310_s4 + $0x220] sm:$0xff] }
  0xa8   : > { %788 = vmatpush.msra.mxu0 %v1669_v5  ;;  %811 = vmatpush.msra.mxu1 %v1670_v6  ;;  %v1745_v5 = vld [vmem:[%s3310_s4 + $0x2a0] sm:$0xff]  ;;  %v1764_v6 = vld [vmem:[%s3310_s4 + $0x338] sm:$0xff] }
  0xa9   : > { %834 = vmatpush.msra.mxu2 %v1671_v7  ;;  %857 = vmatpush.msra.mxu3 %v1672_v9  ;;  %v1780_v7 = vld [vmem:[%s3310_s4 + $0x3b8] sm:$0xff] }
  0xaa   : > { %789 = vmatpush.msra.mxu0 %v1665_v10  ;;  %812 = vmatpush.msra.mxu1 %v1666_v11  ;;  %v1728_v9 = vld [vmem:[%s3310_s4 + $0x218] sm:$0xff]  ;;  %v1763_v11 = vld [vmem:[%s3310_s4 + $0x330] sm:$0xff] }
  0xab   : > { %835 = vmatpush.msra.mxu2 %v1667_v12  ;;  %858 = vmatpush.msra.mxu3 %v1668_v13  ;;  %v1744_v10 = vld [vmem:[%s3310_s4 + $0x298] sm:$0xff]  ;;  %v1779_v12 = vld [vmem:[%s3310_s4 + $0x3b0] sm:$0xff] }
  0xac   : > { %790 = vmatpush.msra.mxu0 %v1661_v14  ;;  %813 = vmatpush.msra.mxu1 %v1662_v15  ;;  %v1727_v13 = vld [vmem:[%s3310_s4 + $0x210] sm:$0xff]  ;;  %v1762_v15 = vld [vmem:[%s3310_s4 + $0x328] sm:$0xff] }
  0xad   : > { %836 = vmatpush.msra.mxu2 %v1663_v16  ;;  %859 = vmatpush.msra.mxu3 %v1664_v17  ;;  %v1743_v14 = vld [vmem:[%s3310_s4 + $0x290] sm:$0xff]  ;;  %v1778_v16 = vld [vmem:[%s3310_s4 + $0x3a8] sm:$0xff] }
  0xae   : > { %791 = vmatpush.msra.mxu0 %v1657_v18  ;;  %814 = vmatpush.msra.mxu1 %v1658_v19  ;;  %v1726_v17 = vld [vmem:[%s3310_s4 + $0x208] sm:$0xff]  ;;  %v1761_v19 = vld [vmem:[%s3310_s4 + $0x320] sm:$0xff] }
  0xaf   : > { %837 = vmatpush.msra.mxu2 %v1659_v21  ;;  %860 = vmatpush.msra.mxu3 %v1660_v22  ;;  %v1742_v18 = vld [vmem:[%s3310_s4 + $0x288] sm:$0xff]  ;;  %v1725_v21 = vld [vmem:[%s3310_s4 + $0x200] sm:$0xff] }
  0xb0   : > { %792 = vmatmul.f32.vlgmr.msra.gmra.mxu0 %v695_v25  ;;  %815 = vmatmul.f32.vlgmr.msra.gmra.mxu1 %v695_v25  ;;  %v1741_v22 = vld [vmem:[%s3310_s4 + $0x280] sm:$0xff] }
  0xb1   : > { %838 = vmatmul.f32.vlgmr.msra.gmra.mxu2 %v695_v25  ;;  %861 = vmatmul.f32.vlgmr.msra.gmra.mxu3 %v695_v25  ;;  %v1158_v25 = vld [vmem:[%s3310_s4 + $0x78] sm:$0xff] }
  0xb2   : > { %1015 = vmatpush.msrb.mxu0 %v1740_v26  ;;  %1038 = vmatpush.msrb.mxu1 %v1756_v27  ;;  %v1174_v26 = vld [vmem:[%s3310_s4 + $0xf8] sm:$0xff]  ;;  %v1759_v27 = vld [vmem:[%s3310_s4 + $0x310] sm:$0xff] }
  0xb3   : > { %1061 = vmatpush.msrb.mxu2 %v1772_v8  ;;  %1084 = vmatpush.msrb.mxu3 %v1788_v28  ;;  %v1775_v8 = vld [vmem:[%s3310_s4 + $0x390] sm:$0xff] }
  0xb4   : > { %1016 = vmatpush.msrb.mxu0 %v1739_v30  ;;  %1039 = vmatpush.msrb.mxu1 %v1755_v31  ;;  %v1157_v28 = vld [vmem:[%s3310_s4 + $0x70] sm:$0xff]  ;;  %v1758_v30 = vld [vmem:[%s3310_s4 + $0x308] sm:$0xff] }
  0xb5   : > { %1062 = vmatpush.msrb.mxu2 %v1771_v32  ;;  %1085 = vmatpush.msrb.mxu3 %v1787_v33  ;;  %v1774_v31 = vld [vmem:[%s3310_s4 + $0x388] sm:$0xff] }
  0xb6   : > { %1017 = vmatpush.msrb.mxu0 %v1738_v34  ;;  %1040 = vmatpush.msrb.mxu1 %v1754_v35  ;;  %v1156_v32 = vld [vmem:[%s3310_s4 + $0x68] sm:$0xff]  ;;  %v1757_v34 = vld [vmem:[%s3310_s4 + $0x300] sm:$0xff] }
  0xb7   : > { %1063 = vmatpush.msrb.mxu2 %v1770_v37  ;;  %1086 = vmatpush.msrb.mxu3 %v1786_v38  ;;  %v1172_v33 = vld [vmem:[%s3310_s4 + $0xe8] sm:$0xff]  ;;  %v1773_v35 = vld [vmem:[%s3310_s4 + $0x380] sm:$0xff] }
  0xb8   : > { %1721 = vmatmul.msk.f32.gmra.mxu0 %vm2592_vm3, %v696_v40  ;;  %1722 = vmatmul.msk.f32.gmra.mxu1 %vm2592_vm3, %v696_v40  ;;  %v1155_v37 = vld [vmem:[%s3310_s4 + $0x60] sm:$0xff] }
  0xb9   : > { %1723 = vmatmul.msk.f32.gmra.mxu2 %vm2592_vm3, %v696_v40  ;;  %1724 = vmatmul.msk.f32.gmra.mxu3 %vm2592_vm3, %v696_v40  ;;  %v1171_v38 = vld [vmem:[%s3310_s4 + $0xe0] sm:$0xff]  ;;  %v1190_v40 = vld [vmem:[%s3310_s4 + $0x178] sm:$0xff] }
  0xba   : > { %1018 = vmatpush.msrb.mxu0 %v1737_v41  ;;  %1041 = vmatpush.msrb.mxu1 %v1753_v42  ;;  %v1206_v41 = vld [vmem:[%s3310_s4 + $0x1f8] sm:$0xff] }
  0xbb   : > { %1064 = vmatpush.msrb.mxu2 %v1769_v43  ;;  %1087 = vmatpush.msrb.mxu3 %v1785_v44  ;;  %v1154_v42 = vld [vmem:[%s3310_s4 + $0x58] sm:$0xff]  ;;  %v1189_v44 = vld [vmem:[%s3310_s4 + $0x170] sm:$0xff] }
  0xbc   : > { %1019 = vmatpush.msrb.mxu0 %v1736_v45  ;;  %1042 = vmatpush.msrb.mxu1 %v1752_v46  ;;  %v1170_v43 = vld [vmem:[%s3310_s4 + $0xd8] sm:$0xff]  ;;  %v1205_v45 = vld [vmem:[%s3310_s4 + $0x1f0] sm:$0xff] }
  0xbd   : > { %1065 = vmatpush.msrb.mxu2 %v1768_v47  ;;  %1088 = vmatpush.msrb.mxu3 %v1784_v48  ;;  %v1153_v46 = vld [vmem:[%s3310_s4 + $0x50] sm:$0xff]  ;;  %v1188_v48 = vld [vmem:[%s3310_s4 + $0x168] sm:$0xff] }
  0xbe   : > { %1020 = vmatpush.msrb.mxu0 %v1735_v50  ;;  %1043 = vmatpush.msrb.mxu1 %v1751_v51  ;;  %v1169_v47 = vld [vmem:[%s3310_s4 + $0xd0] sm:$0xff]  ;;  %v1204_v50 = vld [vmem:[%s3310_s4 + $0x1e8] sm:$0xff] }
  0xbf   : > { %1066 = vmatpush.msrb.mxu2 %v1767_v52  ;;  %1089 = vmatpush.msrb.mxu3 %v1783_v53  ;;  %v1152_v51 = vld [vmem:[%s3310_s4 + $0x48] sm:$0xff]  ;;  %v1187_v53 = vld [vmem:[%s3310_s4 + $0x160] sm:$0xff] }
  0xc0   : > { %1021 = vmatpush.msrb.mxu0 %v1734_v54  ;;  %1044 = vmatpush.msrb.mxu1 %v1750_v55  ;;  %v1168_v52 = vld [vmem:[%s3310_s4 + $0xc8] sm:$0xff]  ;;  %v1203_v54 = vld [vmem:[%s3310_s4 + $0x1e0] sm:$0xff] }
  0xc1   : > { %1067 = vmatpush.msrb.mxu2 %v1766_v56  ;;  %1090 = vmatpush.msrb.mxu3 %v1782_v57  ;;  %v1151_v55 = vld [vmem:[%s3310_s4 + $0x40] sm:$0xff]  ;;  %v1186_v57 = vld [vmem:[%s3310_s4 + $0x158] sm:$0xff] }
  0xc2   : > { %1022 = vmatpush.msrb.mxu0 %v1733_v58  ;;  %1045 = vmatpush.msrb.mxu1 %v1749_v59  ;;  %v1167_v56 = vld [vmem:[%s3310_s4 + $0xc0] sm:$0xff]  ;;  %v1202_v58 = vld [vmem:[%s3310_s4 + $0x1d8] sm:$0xff] }
  0xc3   : > { %1068 = vmatpush.msrb.mxu2 %v1765_v60  ;;  %1091 = vmatpush.msrb.mxu3 %v1781_v61  ;;  %v1150_v59 = vld [vmem:[%s3310_s4 + $0x38] sm:$0xff]  ;;  %v1185_v61 = vld [vmem:[%s3310_s4 + $0x150] sm:$0xff] }
  0xc4   : > { %1023 = vmatpush.msrb.mxu0 %v1732_v62  ;;  %1046 = vmatpush.msrb.mxu1 %v1748_v63  ;;  %v1166_v60 = vld [vmem:[%s3310_s4 + $0xb8] sm:$0xff] }
  0xc5   : > { %1069 = vmatpush.msrb.mxu2 %v1764_v6  ;;  %1092 = vmatpush.msrb.mxu3 %v1780_v7  ;;  %v1164_v6 = vld [vmem:[%s3310_s4 + $0xa8] sm:$0xff]  ;;  %v1183_v7 = vld [vmem:[%s3310_s4 + $0x140] sm:$0xff] }
  0xc6   : > { %1024 = vmatpush.msrb.mxu0 %v1731_v0  ;;  %1047 = vmatpush.msrb.mxu1 %v1747_v1  ;;  %v1201_v0 = vld [vmem:[%s3310_s4 + $0x1d0] sm:$0xff] }
  0xc7   : > { %1070 = vmatpush.msrb.mxu2 %v1763_v11  ;;  %1093 = vmatpush.msrb.mxu3 %v1779_v12  ;;  %v1149_v1 = vld [vmem:[%s3310_s4 + $0x30] sm:$0xff]  ;;  %v1163_v11 = vld [vmem:[%s3310_s4 + $0xa0] sm:$0xff]  ;;  %v1182_v12 = vld [vmem:[%s3310_s4 + $0x138] sm:$0xff] }
  0xc8   : > { %1025 = vmatpush.msrb.mxu0 %v1730_v2  ;;  %1048 = vmatpush.msrb.mxu1 %v1746_v3  ;;  %v1165_v2 = vld [vmem:[%s3310_s4 + $0xb0] sm:$0xff]  ;;  %v1184_v3 = vld [vmem:[%s3310_s4 + $0x148] sm:$0xff] }
  0xc9   : > { %1071 = vmatpush.msrb.mxu2 %v1762_v15  ;;  %1094 = vmatpush.msrb.mxu3 %v1778_v16  ;;  %v1198_v15 = vld [vmem:[%s3310_s4 + $0x1b8] sm:$0xff] }
  0xca   : > { %1026 = vmatpush.msrb.mxu0 %v1729_v4  ;;  %1049 = vmatpush.msrb.mxu1 %v1745_v5  ;;  %v1200_v4 = vld [vmem:[%s3310_s4 + $0x1c8] sm:$0xff]  ;;  %v1146_v16 = vld [vmem:[%s3310_s4 + $0x18] sm:$0xff] }
  0xcb   : > { %1072 = vmatpush.msrb.mxu2 %v1761_v19  ;;  %1095 = vmatpush.msrb.mxu3 %v1777_v20  ;;  %v1148_v5 = vld [vmem:[%s3310_s4 + $0x28] sm:$0xff]  ;;  %v1181_v20 = vld [vmem:[%s3310_s4 + $0x130] sm:$0xff] }
  0xcc   : > { %1027 = vmatpush.msrb.mxu0 %v1728_v9  ;;  %1050 = vmatpush.msrb.mxu1 %v1744_v10  ;;  %v1199_v9 = vld [vmem:[%s3310_s4 + $0x1c0] sm:$0xff] }
  0xcd   : > { %1073 = vmatpush.msrb.mxu2 %v1760_v23  ;;  %1096 = vmatpush.msrb.mxu3 %v1776_v24  ;;  %v1147_v10 = vld [vmem:[%s3310_s4 + $0x20] sm:$0xff]  ;;  %v1161_v23 = vld [vmem:[%s3310_s4 + $0x90] sm:$0xff]  ;;  %v1180_v24 = vld [vmem:[%s3310_s4 + $0x128] sm:$0xff] }
  0xce   : > { %1028 = vmatpush.msrb.mxu0 %v1727_v13  ;;  %1051 = vmatpush.msrb.mxu1 %v1743_v14 }
  0xcf   : > { %1074 = vmatpush.msrb.mxu2 %v1759_v27  ;;  %1097 = vmatpush.msrb.mxu3 %v1775_v8  ;;  %v1160_v27 = vld [vmem:[%s3310_s4 + $0x88] sm:$0xff]  ;;  %v1179_v8 = vld [vmem:[%s3310_s4 + $0x120] sm:$0xff] }
  0xd0   : > { %1029 = vmatpush.msrb.mxu0 %v1726_v17  ;;  %1052 = vmatpush.msrb.mxu1 %v1742_v18  ;;  %v1162_v17 = vld [vmem:[%s3310_s4 + $0x98] sm:$0xff] }
  0xd1   : > { %1075 = vmatpush.msrb.mxu2 %v1758_v30  ;;  %1098 = vmatpush.msrb.mxu3 %v1774_v31  ;;  %v1159_v30 = vld [vmem:[%s3310_s4 + $0x80] sm:$0xff]  ;;  %v1178_v31 = vld [vmem:[%s3310_s4 + $0x118] sm:$0xff] }
  0xd2   : > { %1030 = vmatpush.msrb.mxu0 %v1725_v21  ;;  %1053 = vmatpush.msrb.mxu1 %v1741_v22  ;;  %v1197_v21 = vld [vmem:[%s3310_s4 + $0x1b0] sm:$0xff] }
  0xd3   : > { %1076 = vmatpush.msrb.mxu2 %v1757_v34  ;;  %1099 = vmatpush.msrb.mxu3 %v1773_v35  ;;  %v1145_v22 = vld [vmem:[%s3310_s4 + $0x10] sm:$0xff] }
  0xd4   : > { %1207 = vmatpush.msra.mxu0 %v1158_v25  ;;  %1230 = vmatpush.msra.mxu1 %v1174_v26  ;;  %v1196_v25 = vld [vmem:[%s3310_s4 + $0x1a8] sm:$0xff]  ;;  %v1177_v35 = vld [vmem:[%s3310_s4 + $0x110] sm:$0xff] }
  0xd5   : > { %1253 = vmatpush.msra.mxu2 %v1190_v40  ;;  %1276 = vmatpush.msra.mxu3 %v1206_v41  ;;  %v1144_v26 = vld [vmem:[%s3310_s4 + $0x8] sm:$0xff] }
  0xd6   : > { %1208 = vmatpush.msra.mxu0 %v1157_v28  ;;  %1231 = vmatpush.msra.mxu1 %v1173_v29  ;;  %v1195_v28 = vld [vmem:[%s3310_s4 + $0x1a0] sm:$0xff]  ;;  %v1192_v40 = vld [vmem:[%s3310_s4 + $0x188] sm:$0xff] }
  0xd7   : > { %1254 = vmatpush.msra.mxu2 %v1189_v44  ;;  %1277 = vmatpush.msra.mxu3 %v1205_v45  ;;  %v1143_v29 = vld [vmem:[%s3310_s4] sm:$0xff] }
  0xd8   : > { %1209 = vmatpush.msra.mxu0 %v1156_v32  ;;  %1232 = vmatpush.msra.mxu1 %v1172_v33  ;;  %v1194_v32 = vld [vmem:[%s3310_s4 + $0x198] sm:$0xff]  ;;  %v1191_v44 = vld [vmem:[%s3310_s4 + $0x180] sm:$0xff] }
  0xd9   : > { %1255 = vmatpush.msra.mxu2 %v1188_v48  ;;  %1278 = vmatpush.msra.mxu3 %v1204_v50  ;;  %v2973_v50 = vld [vmem:[%s3309_s3] sm:$0xf] }
  0xda   : > { %1210 = vmatpush.msra.mxu0 %v1155_v37  ;;  %1233 = vmatpush.msra.mxu1 %v1171_v38  ;;  %v1193_v37 = vld [vmem:[%s3310_s4 + $0x190] sm:$0xff]  ;;  %v1176_v38 = vld [vmem:[%s3310_s4 + $0x108] sm:$0xff] }
  0xdb   : > { %1256 = vmatpush.msra.mxu2 %v1187_v53  ;;  %1279 = vmatpush.msra.mxu3 %v1203_v54 }
  0xdc   : > { %1211 = vmatpush.msra.mxu0 %v1154_v42  ;;  %1234 = vmatpush.msra.mxu1 %v1170_v43  ;;  %v1175_v43 = vld [vmem:[%s3310_s4 + $0x100] sm:$0xff] }
  0xdd   : > { %1257 = vmatpush.msra.mxu2 %v1186_v57  ;;  %1280 = vmatpush.msra.mxu3 %v1202_v58 }
  0xde   : > { %1212 = vmatpush.msra.mxu0 %v1153_v46  ;;  %1235 = vmatpush.msra.mxu1 %v1169_v47 }
  0xdf   : > { %1258 = vmatpush.msra.mxu2 %v1185_v61  ;;  %1281 = vmatpush.msra.mxu3 %v1201_v0 }
  0xe0   : > { %1213 = vmatpush.msra.mxu0 %v1152_v51  ;;  %1236 = vmatpush.msra.mxu1 %v1168_v52 }
  0xe1   : > { %1259 = vmatpush.msra.mxu2 %v1184_v3  ;;  %1282 = vmatpush.msra.mxu3 %v1200_v4 }
  0xe2   : > { %1214 = vmatpush.msra.mxu0 %v1151_v55  ;;  %1237 = vmatpush.msra.mxu1 %v1167_v56  ;;  %v894_v55 = vperm.slane %v2973_v50, 0  ;;  %v895_v56 = vperm.slane %v2973_v50, 1 }
  0xe3   : > { %1260 = vmatpush.msra.mxu2 %v1183_v7  ;;  %1283 = vmatpush.msra.mxu3 %v1199_v9 }
  0xe4   : > { %1215 = vmatpush.msra.mxu0 %v1150_v59  ;;  %1238 = vmatpush.msra.mxu1 %v1166_v60 }
  0xe5   : > { %1261 = vmatpush.msra.mxu2 %v1182_v12  ;;  %1284 = vmatpush.msra.mxu3 %v1198_v15  ;;  %v1807_v12 = vld [vmem:[%s3310_s4 + $0x470] sm:$0xff] }
  0xe6   : > { %1216 = vmatpush.msra.mxu0 %v1149_v1  ;;  %1239 = vmatpush.msra.mxu1 %v1165_v2 }
  0xe7   : > { %1262 = vmatpush.msra.mxu2 %v1181_v20  ;;  %1285 = vmatpush.msra.mxu3 %v1197_v21  ;;  %v1806_v20 = vld [vmem:[%s3310_s4 + $0x468] sm:$0xff] }
  0xe8   : > { %1217 = vmatpush.msra.mxu0 %v1148_v5  ;;  %1240 = vmatpush.msra.mxu1 %v1164_v6  ;;  %v896_v5 = vperm.slane %v2973_v50, 2  ;;  %v897_v6 = vperm.slane %v2973_v50, 3  ;;  %v1822_v21 = vld [vmem:[%s3310_s4 + $0x4e8] sm:$0xff] }
  0xe9   : > { %1263 = vmatpush.msra.mxu2 %v1180_v24  ;;  %1286 = vmatpush.msra.mxu3 %v1196_v25  ;;  %v1838_v50 = vld [vmem:[%s3310_s4 + $0x568] sm:$0xff] }
  0xea   : > { %1218 = vmatpush.msra.mxu0 %v1147_v10  ;;  %1241 = vmatpush.msra.mxu1 %v1163_v11 }
  0xeb   : > { %1264 = vmatpush.msra.mxu2 %v1179_v8  ;;  %1287 = vmatpush.msra.mxu3 %v1195_v28  ;;  %v1805_v8 = vld [vmem:[%s3310_s4 + $0x460] sm:$0xff] }
  0xec   : > { %1219 = vmatpush.msra.mxu0 %v1146_v16  ;;  %1242 = vmatpush.msra.mxu1 %v1162_v17  ;;  %v1821_v28 = vld [vmem:[%s3310_s4 + $0x4e0] sm:$0xff] }
  0xed   : > { %1265 = vmatpush.msra.mxu2 %v1178_v31  ;;  %1288 = vmatpush.msra.mxu3 %v1194_v32  ;;  %v1840_v31 = vld [vmem:[%s3310_s4 + $0x578] sm:$0xff] }
  0xee   : > { %1220 = vmatpush.msra.mxu0 %v1145_v22  ;;  %1243 = vmatpush.msra.mxu1 %v1161_v23  ;;  %v1856_v32 = vld [vmem:[%s3310_s4 + $0x5f8] sm:$0xff] }
  0xef   : > { %1266 = vmatpush.msra.mxu2 %v1177_v35  ;;  %1289 = vmatpush.msra.mxu3 %v1193_v37 }
  0xf0   : > { %1221 = vmatpush.msra.mxu0 %v1144_v26  ;;  %1244 = vmatpush.msra.mxu1 %v1160_v27 }
  0xf1   : > { %1267 = vmatpush.msra.mxu2 %v1176_v38  ;;  %1290 = vmatpush.msra.mxu3 %v1192_v40 }
  0xf2   : > { %1222 = vmatpush.msra.mxu0 %v1143_v29  ;;  %1245 = vmatpush.msra.mxu1 %v1159_v30 }
  0xf3   : > { %1268 = vmatpush.msra.mxu2 %v1175_v43  ;;  %1291 = vmatpush.msra.mxu3 %v1191_v44  ;;  %v1855_v44 = vld [vmem:[%s3310_s4 + $0x5f0] sm:$0xff] }
 0x105   : > { %v2849_v62 = vpop.f32.mrf.mxu0  ;;  %v2851_v63 = vpop.f32.mrf.mxu1 }
 0x10c   : > { %v2889_v13 = vpop.f32.mrf.mxu2  ;;  %v2891_v14 = vpop.f32.mrf.mxu3 }
 0x10f   : > { %v2902_v18 = vpop.f32.mrf.mxu0  ;;  %v2904_v19 = vpop.f32.mrf.mxu1 }
 0x116   : > { %v2948_v33 = vpop.f32.mrf.mxu2  ;;  %v2950_v34 = vpop.f32.mrf.mxu3 }
 0x119   : > { %v599_v41 = vpop.f32.mrf.mxu0  ;;  %v622_v42 = vpop.f32.mrf.mxu1 }
 0x11a   : > { %v674_v53 = vadd.f32 %v599_v41, %v2849_v62  ;;  %v675_v54 = vadd.f32 %v622_v42, %v2851_v63  ;;  %v1808_v62 = vld [vmem:[%s3310_s4 + $0x478] sm:$0xff] }
 0x11b   : > { %v1824_v63 = vld [vmem:[%s3310_s4 + $0x4f8] sm:$0xff] }
 0x11c   : > { %v1804_v41 = vld [vmem:[%s3310_s4 + $0x458] sm:$0xff] }
 0x11d   : > { %v1820_v42 = vld [vmem:[%s3310_s4 + $0x4d8] sm:$0xff] }
 0x120   : > { %v645_v45 = vpop.f32.mrf.mxu2  ;;  %v668_v46 = vpop.f32.mrf.mxu3 }
 0x121   : > { %v676_v3 = vadd.f32 %v645_v45, %v2889_v13  ;;  %v677_v4 = vadd.f32 %v668_v46, %v2891_v14  ;;  %v1823_v13 = vld [vmem:[%s3310_s4 + $0x4f0] sm:$0xff] }
 0x122   : > { %v1803_v45 = vld [vmem:[%s3310_s4 + $0x450] sm:$0xff] }
 0x123   : > { %v602_v47 = vpop.f32.mrf.mxu0  ;;  %v625_v48 = vpop.f32.mrf.mxu1  ;;  %v1819_v46 = vld [vmem:[%s3310_s4 + $0x4d0] sm:$0xff] }
 0x124   : > { %v678_v7 = vadd.f32 %v602_v47, %v2902_v18  ;;  %v679_v9 = vadd.f32 %v625_v48, %v2904_v19 }
 0x12a   : > { %v648_v51 = vpop.f32.mrf.mxu2  ;;  %v671_v52 = vpop.f32.mrf.mxu3 }
 0x12b   : > { %v680_v35 = vadd.f32 %v648_v51, %v2948_v33  ;;  %v681_v37 = vadd.f32 %v671_v52, %v2950_v34  ;;  %v1839_v34 = vld [vmem:[%s3310_s4 + $0x570] sm:$0xff]  ;;  %v1854_v51 = vld [vmem:[%s3310_s4 + $0x5e8] sm:$0xff] }
 0x12c   : > { %v1802_v52 = vld [vmem:[%s3310_s4 + $0x448] sm:$0xff] }
 0x12d   : > { %v793_v57 = vpop.f32.mrf.mxu0  ;;  %v816_v58 = vpop.f32.mrf.mxu1 }
 0x12e   : > { %v868_v59 = vadd.f32 %v793_v57, %v674_v53  ;;  %v869_v60 = vadd.f32 %v816_v58, %v675_v54  ;;  %v1818_v53 = vld [vmem:[%s3310_s4 + $0x4c8] sm:$0xff]  ;;  %v1853_v57 = vld [vmem:[%s3310_s4 + $0x5e0] sm:$0xff] }
 0x130   : > { %v902_v61 = vadd.f32 %v894_v55, %v868_v59  ;;  %v903_v0 = vadd.f32 %v895_v56, %v869_v60  ;;  %v1801_v60 = vld [vmem:[%s3310_s4 + $0x440] sm:$0xff] }
 0x132   : > { %v2979_v1 = vmax.f32 %v902_v61, 0.0  ;;  %v2981_v2 = vmax.f32 %v903_v0, 0.0  ;;  %v1817_v61 = vld [vmem:[%s3310_s4 + $0x4c0] sm:$0xff]  ;;  %v1836_v0 = vld [vmem:[%s3310_s4 + $0x558] sm:$0xff] }
 0x134   : > { %v839_v10 = vpop.f32.mrf.mxu2  ;;  %v862_v11 = vpop.f32.mrf.mxu3  ;;  %1031 = vmatmul.f32.vlgmr.msrb.gmra.mxu0 %v2979_v1  ;;  %1054 = vmatmul.f32.vlgmr.msrb.gmra.mxu1 %v2981_v2 }
 0x135   : > { %v870_v14 = vadd.f32 %v839_v10, %v676_v3  ;;  %v871_v15 = vadd.f32 %v862_v11, %v677_v4  ;;  %v796_v16 = vpop.f32.mrf.mxu0  ;;  %v819_v17 = vpop.f32.mrf.mxu1  ;;  %1402 = vmatpush.msrb.mxu0 %v1808_v62  ;;  %1425 = vmatpush.msrb.mxu1 %v1824_v63  ;;  %v1852_v62 = vld [vmem:[%s3310_s4 + $0x5d8] sm:$0xff]  ;;  %v1117_v63 = vrot.slane %v2979_v1, 7  ;;  %v1118_v3 = vrot.slane %v2981_v2, 7  ;;  %v1851_v10 = vld [vmem:[%s3310_s4 + $0x5d0] sm:$0xff] }
 0x136   : > { %v872_v18 = vadd.f32 %v796_v16, %v678_v7  ;;  %v873_v19 = vadd.f32 %v819_v17, %v679_v9  ;;  %v1800_v4 = vld [vmem:[%s3310_s4 + $0x438] sm:$0xff]  ;;  %v1835_v9 = vld [vmem:[%s3310_s4 + $0x550] sm:$0xff]  ;;  %v1798_v17 = vld [vmem:[%s3310_s4 + $0x428] sm:$0xff] }
 0x137   : > { %v904_v22 = vadd.f32 %v896_v5, %v870_v14  ;;  %v905_v23 = vadd.f32 %v897_v6, %v871_v15  ;;  %1403 = vmatpush.msrb.mxu0 %v1807_v12  ;;  %1426 = vmatpush.msrb.mxu1 %v1823_v13  ;;  %v1799_v11 = vld [vmem:[%s3310_s4 + $0x430] sm:$0xff]  ;;  %v1834_v13 = vld [vmem:[%s3310_s4 + $0x548] sm:$0xff] }
 0x138   : > { %v906_v24 = vadd.f32 %v894_v55, %v872_v18  ;;  %v907_v25 = vadd.f32 %v895_v56, %v873_v19  ;;  %v1837_v56 = vld [vmem:[%s3310_s4 + $0x560] sm:$0xff]  ;;  %v1815_v12 = vld [vmem:[%s3310_s4 + $0x4b0] sm:$0xff]  ;;  %v1850_v14 = vld [vmem:[%s3310_s4 + $0x5c8] sm:$0xff] }
 0x139   : > { %v3009_v26 = vmax.f32 %v904_v22, 0.0  ;;  %v3011_v27 = vmax.f32 %v905_v23, 0.0  ;;  %1404 = vmatpush.msrb.mxu0 %v1806_v20  ;;  %1427 = vmatpush.msrb.mxu1 %v1822_v21  ;;  %v1814_v18 = vld [vmem:[%s3310_s4 + $0x4a8] sm:$0xff]  ;;  %v1833_v19 = vld [vmem:[%s3310_s4 + $0x540] sm:$0xff] }
 0x13a   : > { %v3019_v29 = vmax.f32 %v906_v24, 0.0  ;;  %v3021_v30 = vmax.f32 %v907_v25, 0.0  ;;  %v1849_v20 = vld [vmem:[%s3310_s4 + $0x5c0] sm:$0xff] }
 0x13b   : > { %1077 = vmatmul.f32.vlgmr.msrb.gmra.mxu2 %v3009_v26  ;;  %1100 = vmatmul.f32.vlgmr.msrb.gmra.mxu3 %v3011_v27  ;;  %v1119_v21 = vrot.slane %v3009_v26, 7  ;;  %v1120_v22 = vrot.slane %v3011_v27, 7  ;;  %v1797_v23 = vld [vmem:[%s3310_s4 + $0x420] sm:$0xff] }
 0x13c   : > { %v842_v38 = vpop.f32.mrf.mxu2  ;;  %v865_v40 = vpop.f32.mrf.mxu3  ;;  %1405 = vmatpush.msrb.mxu0 %v1805_v8  ;;  %1428 = vmatpush.msrb.mxu1 %v1821_v28  ;;  %v1121_v58 = vrot.slane %v3019_v29, 7  ;;  %v1122_v59 = vrot.slane %v3021_v30, 7  ;;  %v1813_v24 = vld [vmem:[%s3310_s4 + $0x4a0] sm:$0xff]  ;;  %v1832_v28 = vld [vmem:[%s3310_s4 + $0x538] sm:$0xff] }
 0x13d   : > { %v874_v43 = vadd.f32 %v842_v38, %v680_v35  ;;  %v875_v33 = vadd.f32 %v865_v40, %v681_v37  ;;  %1448 = vmatpush.msrb.mxu2 %v1840_v31  ;;  %1471 = vmatpush.msrb.mxu3 %v1856_v32  ;;  %v1848_v31 = vld [vmem:[%s3310_s4 + $0x5b8] sm:$0xff]  ;;  %v1831_v38 = vld [vmem:[%s3310_s4 + $0x530] sm:$0xff] }
 0x13e   : > { %1034 = vmatmul.f32.gmra.mxu0 %v3019_v29  ;;  %1057 = vmatmul.f32.gmra.mxu1 %v3021_v30  ;;  %v1130_v7 = vsel %vm501_vm0, %v1122_v59, %v1118_v3  ;;  %v1796_v32 = vld [vmem:[%s3310_s4 + $0x418] sm:$0xff]  ;;  %v1125_v37 = vsel %vm501_vm0, %v1117_v63, %v1121_v58  ;;  %v1126_v49 = vsel %vm501_vm0, %v1118_v3, %v1122_v59  ;;  %v1847_v40 = vld [vmem:[%s3310_s4 + $0x5b0] sm:$0xff]  ;;  %v1841_v3 = vld [vmem:[%s3310_s4 + $0x580] sm:$0xff] }
 0x13f   : > { %v908_v47 = vadd.f32 %v896_v5, %v874_v43  ;;  %v909_v48 = vadd.f32 %v897_v6, %v875_v33  ;;  %1406 = vmatpush.msrb.mxu0 %v1804_v41  ;;  %1429 = vmatpush.msrb.mxu1 %v1820_v42  ;;  %v1816_v5 = vld [vmem:[%s3310_s4 + $0x4b8] sm:$0xff]  ;;  %v1129_v6 = vsel %vm501_vm0, %v1121_v58, %v1117_v63  ;;  %v1795_v41 = vld [vmem:[%s3310_s4 + $0x410] sm:$0xff]  ;;  %v1830_v43 = vld [vmem:[%s3310_s4 + $0x528] sm:$0xff] }
 0x140   : > { %1449 = vmatpush.msrb.mxu2 %v1839_v34  ;;  %1472 = vmatpush.msrb.mxu3 %v1855_v44  ;;  %v1812_v35 = vld [vmem:[%s3310_s4 + $0x498] sm:$0xff]  ;;  %v1811_v42 = vld [vmem:[%s3310_s4 + $0x490] sm:$0xff]  ;;  %v1846_v33 = vld [vmem:[%s3310_s4 + $0x5a8] sm:$0xff] }
 0x141   : > { %v3065_v54 = vmax.f32 %v908_v47, 0.0  ;;  %v3067_v55 = vmax.f32 %v909_v48, 0.0  ;;  %1407 = vmatpush.msrb.mxu0 %v1803_v45  ;;  %1430 = vmatpush.msrb.mxu1 %v1819_v46  ;;  %v1794_v34 = vld [vmem:[%s3310_s4 + $0x408] sm:$0xff]  ;;  %v1829_v45 = vld [vmem:[%s3310_s4 + $0x520] sm:$0xff]  ;;  %v1315_v47 = vrot.slane %v3019_v29, 1  ;;  %v1316_v48 = vrot.slane %v3021_v30, 1 }
 0x142   : > { %1450 = vmatpush.msrb.mxu2 %v1838_v50  ;;  %1473 = vmatpush.msrb.mxu3 %v1854_v51  ;;  %v1810_v44 = vld [vmem:[%s3310_s4 + $0x488] sm:$0xff]  ;;  %v1845_v46 = vld [vmem:[%s3310_s4 + $0x5a0] sm:$0xff]  ;;  %v1828_v30 = vld [vmem:[%s3310_s4 + $0x518] sm:$0xff] }
 0x143   : > { %1408 = vmatpush.msrb.mxu0 %v1802_v52  ;;  %1431 = vmatpush.msrb.mxu1 %v1818_v53  ;;  %v1123_v15 = vrot.slane %v3065_v54, 7  ;;  %v1124_v16 = vrot.slane %v3067_v55, 7  ;;  %v1793_v50 = vld [vmem:[%s3310_s4 + $0x400] sm:$0xff]  ;;  %v1844_v53 = vld [vmem:[%s3310_s4 + $0x598] sm:$0xff]  ;;  %v1827_v58 = vld [vmem:[%s3310_s4 + $0x510] sm:$0xff] }
 0x144   : > { %1451 = vmatpush.msrb.mxu2 %v1837_v56  ;;  %1474 = vmatpush.msrb.mxu3 %v1853_v57  ;;  %v1809_v51 = vld [vmem:[%s3310_s4 + $0x480] sm:$0xff]  ;;  %v1311_v56 = vrot.slane %v2979_v1, 1  ;;  %v1312_v57 = vrot.slane %v2981_v2, 1  ;;  %v1843_v59 = vld [vmem:[%s3310_s4 + $0x590] sm:$0xff]  ;;  %v1826_v2 = vld [vmem:[%s3310_s4 + $0x508] sm:$0xff] }
 0x145   : > { %1080 = vmatmul.f32.gmra.mxu2 %v3065_v54  ;;  %1103 = vmatmul.f32.gmra.mxu3 %v3067_v55  ;;  %v1131_v25 = vsel %vm501_vm0, %v1123_v15, %v1119_v21  ;;  %v1132_v8 = vsel %vm501_vm0, %v1124_v16, %v1120_v22  ;;  %v1127_v52 = vsel %vm501_vm0, %v1119_v21, %v1123_v15  ;;  %v1825_v63 = vld [vmem:[%s3310_s4 + $0x500] sm:$0xff] }
 0x146   : > { %1409 = vmatpush.msrb.mxu0 %v1801_v60  ;;  %1432 = vmatpush.msrb.mxu1 %v1817_v61  ;;  %v1128_v29 = vsel %vm501_vm0, %v1120_v22, %v1124_v16  ;;  %v1319_v60 = vsel %vm694_vm2, %v1311_v56, %v1315_v47  ;;  %v1320_v1 = vsel %vm694_vm2, %v1312_v57, %v1316_v48  ;;  %v1842_v61 = vld [vmem:[%s3310_s4 + $0x588] sm:$0xff] }
 0x147   : > { %1452 = vmatpush.msrb.mxu2 %v1836_v0  ;;  %1475 = vmatpush.msrb.mxu3 %v1852_v62  ;;  %v1317_v0 = vrot.slane %v3065_v54, 1  ;;  %v1318_v62 = vrot.slane %v3067_v55, 1 }
 0x148   : > { %1789 = vmatmul.msk.f32.vlgmr.msra.gmra.mxu0 %vm2437_vm1, %v1129_v6  ;;  %1790 = vmatmul.msk.f32.vlgmr.msra.gmra.mxu1 %vm2437_vm1, %v1130_v7  ;;  %v1323_v6 = vsel %vm694_vm2, %v1315_v47, %v1311_v56 }
 0x149   : > { %1410 = vmatpush.msrb.mxu0 %v1800_v4  ;;  %1433 = vmatpush.msrb.mxu1 %v1816_v5  ;;  %v1313_v4 = vrot.slane %v3009_v26, 1  ;;  %v1314_v5 = vrot.slane %v3011_v27, 1  ;;  %v1324_v26 = vsel %vm694_vm2, %v1316_v48, %v1312_v57 }
 0x14a   : > { %1453 = vmatpush.msrb.mxu2 %v1835_v9  ;;  %1476 = vmatpush.msrb.mxu3 %v1851_v10 }
 0x14b   : > { %1411 = vmatpush.msrb.mxu0 %v1799_v11  ;;  %1434 = vmatpush.msrb.mxu1 %v1815_v12  ;;  %v1321_v54 = vsel %vm694_vm2, %v1313_v4, %v1317_v0  ;;  %v1322_v55 = vsel %vm694_vm2, %v1314_v5, %v1318_v62  ;;  %v1325_v27 = vsel %vm694_vm2, %v1317_v0, %v1313_v4 }
 0x14c   : > { %1454 = vmatpush.msrb.mxu2 %v1834_v13  ;;  %1477 = vmatpush.msrb.mxu3 %v1850_v14  ;;  %v1326_v7 = vsel %vm694_vm2, %v1318_v62, %v1314_v5 }
 0x14d   : > { %1412 = vmatpush.msrb.mxu0 %v1798_v17  ;;  %1435 = vmatpush.msrb.mxu1 %v1814_v18 }
 0x14e   : > { %1455 = vmatpush.msrb.mxu2 %v1833_v19  ;;  %1478 = vmatpush.msrb.mxu3 %v1849_v20 }
 0x14f   : > { %1791 = vmatmul.msk.f32.vlgmr.msra.gmra.mxu2 %vm2437_vm1, %v1131_v25  ;;  %1792 = vmatmul.msk.f32.vlgmr.msra.gmra.mxu3 %vm2437_vm1, %v1132_v8 }
 0x150   : > { %1413 = vmatpush.msrb.mxu0 %v1797_v23  ;;  %1436 = vmatpush.msrb.mxu1 %v1813_v24 }
 0x151   : > { %1456 = vmatpush.msrb.mxu2 %v1832_v28  ;;  %1479 = vmatpush.msrb.mxu3 %v1848_v31 }
 0x152   : > { %1226 = vmatmul.f32.gmra.mxu0 %v1125_v37  ;;  %1249 = vmatmul.f32.gmra.mxu1 %v1126_v49 }
 0x153   : > { %1414 = vmatpush.msrb.mxu0 %v1796_v32  ;;  %1437 = vmatpush.msrb.mxu1 %v1812_v35 }
 0x154   : > { %1457 = vmatpush.msrb.mxu2 %v1831_v38  ;;  %1480 = vmatpush.msrb.mxu3 %v1847_v40 }
 0x155   : > { %1415 = vmatpush.msrb.mxu0 %v1795_v41  ;;  %1438 = vmatpush.msrb.mxu1 %v1811_v42 }
 0x156   : > { %1458 = vmatpush.msrb.mxu2 %v1830_v43  ;;  %1481 = vmatpush.msrb.mxu3 %v1846_v33 }
 0x157   : > { %1416 = vmatpush.msrb.mxu0 %v1794_v34  ;;  %1439 = vmatpush.msrb.mxu1 %v1810_v44 }
 0x158   : > { %1459 = vmatpush.msrb.mxu2 %v1829_v45  ;;  %1482 = vmatpush.msrb.mxu3 %v1845_v46 }
 0x159   : > { %1272 = vmatmul.f32.gmra.mxu2 %v1127_v52  ;;  %1295 = vmatmul.f32.gmra.mxu3 %v1128_v29 }
 0x15a   : > { %1417 = vmatpush.msrb.mxu0 %v1793_v50  ;;  %1440 = vmatpush.msrb.mxu1 %v1809_v51 }
 0x15b   : > { %1460 = vmatpush.msrb.mxu2 %v1828_v30  ;;  %1483 = vmatpush.msrb.mxu3 %v1844_v53 }
 0x15c   : > { %1418 = vmatmul.f32.vlgmr.msrb.gmra.mxu0 %v1319_v60  ;;  %1441 = vmatmul.f32.vlgmr.msrb.gmra.mxu1 %v1320_v1  ;;  %v1873_v60 = vld [vmem:[%s3311_s5] ss:$0 sm:$0xff] }
 0x15d   : > { %1461 = vmatpush.msrb.mxu2 %v1827_v58  ;;  %1484 = vmatpush.msrb.mxu3 %v1843_v59 }
 0x15f   : > { %1462 = vmatpush.msrb.mxu2 %v1826_v2  ;;  %1485 = vmatpush.msrb.mxu3 %v1842_v61 }
 0x161   : > { %1463 = vmatpush.msrb.mxu2 %v1825_v63  ;;  %1486 = vmatpush.msrb.mxu3 %v1841_v3 }
 0x162   : > { %1464 = vmatmul.f32.vlgmr.msrb.gmra.mxu2 %v1321_v54  ;;  %1487 = vmatmul.f32.vlgmr.msrb.gmra.mxu3 %v1322_v55 }
 0x164   : > { %1857 = vmatmul.msk.f32.gmra.mxu0 %vm2592_vm3, %v1323_v6  ;;  %1858 = vmatmul.msk.f32.gmra.mxu1 %vm2592_vm3, %v1324_v26 }
 0x16a   : > { %1859 = vmatmul.msk.f32.gmra.mxu2 %vm2592_vm3, %v1325_v27  ;;  %1860 = vmatmul.msk.f32.gmra.mxu3 %vm2592_vm3, %v1326_v7 }
 0x1b1   : > { %v1032_v9 = vpop.f32.mrf.mxu0  ;;  %v1055_v10 = vpop.f32.mrf.mxu1 }
 0x1b2   : > { %v1056_v11 = vadd.f32 %v1055_v10, %v1032_v9 }
 0x1bb   : > { %v1035_v36 = vpop.f32.mrf.mxu0  ;;  %v1058_v15 = vpop.f32.mrf.mxu1 }
 0x1bc   : > { %v1059_v39 = vadd.f32 %v1058_v15, %v1035_v36 }
 0x1be   : > { %v1078_v12 = vpop.f32.mrf.mxu2  ;;  %v1101_v13 = vpop.f32.mrf.mxu3 }
 0x1bf   : > { %v1079_v14 = vadd.f32 %v1078_v12, %v1056_v11 }
 0x1c1   : > { %v1102_v16 = vadd.f32 %v1101_v13, %v1079_v14 }
 0x1c3   : > { %1107 = vst [vmem:[%s3287_s10] sm:$0xff] %v1102_v16 }
 0x1c5   : > { %v1224_v20 = vpop.f32.mrf.mxu0  ;;  %v1247_v21 = vpop.f32.mrf.mxu1 }
 0x1c6   : > { %v1248_v23 = vadd.f32 %v1247_v21, %v1224_v20 }
 0x1c8   : > { %v1081_v17 = vpop.f32.mrf.mxu2  ;;  %v1104_v18 = vpop.f32.mrf.mxu3 }
 0x1c9   : > { %v1082_v19 = vadd.f32 %v1081_v17, %v1059_v39 }
 0x1ca   : > { %v1141_v28 = vld [vmem:[%s3287_s10] sm:$0xff] }
 0x1cb   : > { %v1105_v22 = vadd.f32 %v1104_v18, %v1082_v19 }
 0x1cd   : > { %1108 = vst [vmem:[%s3287_s10 + $0x8] sm:$0xff] %v1105_v22 }
 0x1cf   : > { %v1227_v31 = vpop.f32.mrf.mxu0  ;;  %v1250_v32 = vpop.f32.mrf.mxu1 }
 0x1d0   : > { %v1251_v49 = vadd.f32 %v1250_v32, %v1227_v31 }
 0x1d2   : > { %v1270_v24 = vpop.f32.mrf.mxu2  ;;  %v1293_v25 = vpop.f32.mrf.mxu3 }
 0x1d3   : > { %v1271_v8 = vadd.f32 %v1270_v24, %v1248_v23 }
 0x1d5   : > { %v1294_v35 = vadd.f32 %v1293_v25, %v1271_v8 }
 0x1d7   : > { %v1299_v37 = vadd.f32 %v1294_v35, %v1141_v28 }
 0x1d9   : > { %1301 = vst [vmem:[%s3287_s10] sm:$0xff] %v1299_v37  ;;  %v1419_v42 = vpop.f32.mrf.mxu0  ;;  %v1442_v43 = vpop.f32.mrf.mxu1 }
 0x1da   : > { %v1443_v44 = vadd.f32 %v1442_v43, %v1419_v42 }
 0x1dc   : > { %v1273_v38 = vpop.f32.mrf.mxu2  ;;  %v1296_v40 = vpop.f32.mrf.mxu3 }
 0x1dd   : > { %v1274_v41 = vadd.f32 %v1273_v38, %v1251_v49 }
 0x1df   : > { %v1297_v33 = vadd.f32 %v1296_v40, %v1274_v41 }
 0x1e0   : > { %v1335_v52 = vld [vmem:[%s3287_s10] sm:$0xff] }
 0x1e1   : > { %v1300_v34 = vadd.f32 %v1297_v33, %v1105_v22  ;;  %v1422_v48 = vpop.f32.mrf.mxu0  ;;  %v1445_v50 = vpop.f32.mrf.mxu1 }
 0x1e2   : > { %v1446_v30 = vadd.f32 %v1445_v50, %v1422_v48 }
 0x1e3   : > { %1302 = vst [vmem:[%s3287_s10 + $0x8] sm:$0xff] %v1300_v34 }
 0x1e5   : > { %v1465_v45 = vpop.f32.mrf.mxu2  ;;  %v1488_v46 = vpop.f32.mrf.mxu3 }
 0x1e6   : > { %v1466_v47 = vadd.f32 %v1465_v45, %v1443_v44 }
 0x1e8   : > { %v1489_v51 = vadd.f32 %v1488_v46, %v1466_v47 }
 0x1ea   : > { %v1494_v29 = vadd.f32 %v1489_v51, %v1335_v52 }
 0x1ec   : > { %1496 = vst [vmem:[%s3287_s10] sm:$0xff] %v1494_v29 }
 0x1ed   : > { %v1468_v53 = vpop.f32.mrf.mxu2  ;;  %v1491_v57 = vpop.f32.mrf.mxu3 }
 0x1ee   : > { %v1469_v56 = vadd.f32 %v1468_v53, %v1446_v30 }
 0x1f0   : > { %v1492_v58 = vadd.f32 %v1491_v57, %v1469_v56 }
 0x1f2   : > { %v1495_v59 = vadd.f32 %v1492_v58, %v1300_v34 }
 0x1f3   : > { %v1498_v1 = vld [vmem:[%s3287_s10] sm:$0xff] }
 0x1f4   : > { %1497 = vst [vmem:[%s3287_s10 + $0x8] sm:$0xff] %v1495_v59  ;;  %v1504_v2 = vadd.f32 %v1873_v60, %v1498_v1  ;;  %v1505_v61 = vadd.f32 %v1873_v60, %v1495_v59 }
 0x1f6   : > { %1506 = vst [vmem:[%s3287_s10] sm:$0xff] %v1504_v2 }
 0x1f7   : > { %1507 = vst [vmem:[%s3287_s10 + $0x8] sm:$0xff] %v1505_v61 }
 0x1f8 PF: > { %s16_s21 = sadd.s32 1, %s1880_s21  }
 0x1f9   : > { %p13_p4 = scmp.ge.s32.totalorder %s16_s21, 4  }
 0x1fb   :  { %15 = sbr.rel (!%p13_p4) target bundleno = 1 (0x1), region = 81 }

</bundles_post_ra>
